<compile_context>
chip_gen: v7x
topology: tpu7x:2x2x1
jax: 0.10.0
libtpu: 0.0.40
codegen_flags: <defaults>
</compile_context>

<pallas_src>
import jax
import jax.numpy as jnp
from jax import lax
from jax.experimental import pallas as pl
from jax.experimental.pallas import tpu as pltpu

IN_FEATS = 225     # 15x15 gomoku board
IN_PAD = 256       # K padded to a full MXU contraction
H1 = 512
H2 = 64
OUT = 1
TB_DEFAULT = 512   # batch tile (lane axis inside the kernel)


def nnue_kernel(p1_ref, p2_ref,
                w1_ref, b1_ref,
                w2_ref, b2_ref,
                wh1_ref, wh2_ref, bh_ref,
                wo_ref, bo_ref,
                out_ref):
    """Transposed layout: activations are (features, batch_tile)."""
    cd = w1_ref.dtype  # MXU operand dtype (bf16 by default, f32 optional)

    # Boards arrive batch-major int8 (tb, 256); cast on the VPU (slack slot).
    p1 = p1_ref[...].astype(jnp.float32).astype(cd)
    p2 = p2_ref[...].astype(jnp.float32).astype(cd)

    # First layer: trans-RHS contraction (H1, 256) x (tb, 256)^T -> (H1, tb),
    # f32 accumulation.  No wrapper-side transpose needed.
    dn = (((1,), (1,)), ((), ()))
    x1 = lax.dot_general(w1_ref[...], p1, dn, preferred_element_type=jnp.float32)
    x1 = jnp.maximum(x1 + b1_ref[...], 0.0)
    x2 = lax.dot_general(w2_ref[...], p2, dn, preferred_element_type=jnp.float32)
    x2 = jnp.maximum(x2 + b2_ref[...], 0.0)

    # Hidden layer on the (virtual) concat [x1; x2] -> split weight halves.
    h = (jnp.dot(wh1_ref[...], x1.astype(cd), preferred_element_type=jnp.float32)
         + jnp.dot(wh2_ref[...], x2.astype(cd), preferred_element_type=jnp.float32)
         + bh_ref[...])
    h = jnp.maximum(h, 0.0)                                  # (H2, tb), f32

    # Output head: VPU multiply + sublane reduce; (1, tb) lane-dense store.
    out_ref[...] = (jnp.sum(h * wo_ref[...], axis=0, keepdims=True)
                    + bo_ref[...])


def prepare_params(params, compute_dtype=jnp.bfloat16):
    """One-time weight prep (hoisted out of the forward path).

    Takes PyTorch-layout params (weight (out, in), bias (out,)) and returns
    kernel-ready tensors: K padded to 256, hidden weight split into the two
    concat halves, biases as columns, MXU operands cast to `compute_dtype`
    (f32 kept for bias/ReLU/reduce math).
    """
    w1, b1, w2, b2, wh, bh, wo, bo = params
    cd = compute_dtype

    def pad_w(w):                              # (H1, 225) -> (H1, 256)
        return jnp.pad(w, ((0, 0), (0, IN_PAD - IN_FEATS))).astype(cd)

    return (
        pad_w(w1), b1.reshape(H1, 1).astype(jnp.float32),
        pad_w(w2), b2.reshape(H1, 1).astype(jnp.float32),
        wh[:, :H1].astype(cd),                 # top half of concat
        wh[:, H1:].astype(cd),                 # bottom half of concat
        bh.reshape(H2, 1).astype(jnp.float32),
        wo.reshape(H2, 1).astype(jnp.float32),
        bo.reshape(1, 1).astype(jnp.float32),
    )


def _pick_tb(batch, tb_max):
    """Lane-aligned batch tile; keep >= 2 grid steps when the batch allows
    it so v7x can shard the 'parallel' axis across both TensorCores."""
    tb_max = 128 * max(1, tb_max // 128)
    b128 = 128 * pl.cdiv(batch, 128)
    tb = max(128, min(tb_max, b128))
    if b128 > 128 and pl.cdiv(b128, tb) < 2:
        tb = 128 * pl.cdiv(b128 // 2, 128)
    return tb


def nnue_forward(p1, p2, prepped_params, *, tb=TB_DEFAULT):
    """p1, p2: (B, 225) binary boards (any real/bool dtype). Returns (B, 1) f32."""
    w1, b1, w2, b2, wh1, wh2, bh, wo, bo = prepped_params
    B = p1.shape[0]
    tb = _pick_tb(B, tb)
    b_pad = tb * pl.cdiv(B, tb)
    grid = (b_pad // tb,)

    # Boards: int8 (exact for 0/1), batch-major, K padded. No transpose ->
    # no extra full HBM pass in front of the kernel; int8 quarters the only
    # recurring HBM stream.
    def pad_in(p):                             # (B, 225) -> (b_pad, 256) int8
        return jnp.pad(p.astype(jnp.int8),
                       ((0, b_pad - B), (0, IN_PAD - IN_FEATS)))

    p1k, p2k = pad_in(p1), pad_in(p2)

    def full(shape):                           # VMEM-resident across steps
        return pl.BlockSpec(shape, lambda i: (0, 0))

    board_spec = pl.BlockSpec((tb, IN_PAD), lambda i: (i, 0))

    out = pl.pallas_call(
        nnue_kernel,
        out_shape=jax.ShapeDtypeStruct((1, b_pad), jnp.float32),
        grid_spec=pltpu.PrefetchScalarGridSpec(
            num_scalar_prefetch=0,
            grid=grid,
            in_specs=[
                board_spec,                 # p1 (int8, batch-major, K-padded)
                board_spec,                 # p2
                full((H1, IN_PAD)),         # w1
                full((H1, 1)),              # b1
                full((H1, IN_PAD)),         # w2
                full((H1, 1)),              # b2
                full((H2, H1)),             # wh (first half of concat)
                full((H2, H1)),             # wh (second half)
                full((H2, 1)),              # bh
                full((H2, 1)),              # wo (column, for the reduce)
                full((1, 1)),               # bo
            ],
            out_specs=pl.BlockSpec((1, tb), lambda i: (0, i)),
        ),
        compiler_params=pltpu.CompilerParams(
            dimension_semantics=("parallel",)),
    )(p1k, p2k, w1, b1, w2, b2, wh1, wh2, bh, wo, bo)

    return out[0, :B].reshape(B, 1)


def init_params(key):
    """PyTorch nn.Linear shapes: weight (out, in), bias (out,); fan_in bounds."""
    ks = jax.random.split(key, 8)

    def uniform(k, shape, fan_in):
        bound = 1.0 / jnp.sqrt(jnp.float32(fan_in))
        return jax.random.uniform(k, shape, jnp.float32, -bound, bound)

    w1 = uniform(ks[0], (H1, IN_FEATS), IN_FEATS)
    b1 = uniform(ks[1], (H1,), IN_FEATS)
    w2 = uniform(ks[2], (H1, IN_FEATS), IN_FEATS)
    b2 = uniform(ks[3], (H1,), IN_FEATS)
    wh = uniform(ks[4], (H2, 2 * H1), 2 * H1)
    bh = uniform(ks[5], (H2,), 2 * H1)
    wo = uniform(ks[6], (OUT, H2), H2)
    bo = uniform(ks[7], (OUT,), H2)
    return (w1, b1, w2, b2, wh, bh, wo, bo)


def nnue_reference(p1, p2, params):
    w1, b1, w2, b2, wh, bh, wo, bo = params
    x1 = jnp.maximum(p1 @ w1.T + b1, 0.0)
    x2 = jnp.maximum(p2 @ w2.T + b2, 0.0)
    x = jnp.concatenate([x1, x2], axis=1)
    h = jnp.maximum(x @ wh.T + bh, 0.0)
    return h @ wo.T + bo


if __name__ == "__main__":
    key = jax.random.PRNGKey(0)
    k_p, k_p1, k_p2 = jax.random.split(key, 3)

    params = init_params(k_p)

    B = 16  # small batch (padded to one 128-wide lane tile inside the wrapper)
    p1_board = jax.random.bernoulli(k_p1, 0.3, (B, IN_FEATS)).astype(jnp.float32)
    p2_board = jax.random.bernoulli(k_p2, 0.3, (B, IN_FEATS)).astype(jnp.float32)

    ref = nnue_reference(p1_board, p2_board, params)

    # Default path: bf16 MXU operands (native on v5e/v6e/v7x), f32 accumulation
    # and f32 bias/ReLU/reduce.  Boards are 0/1 so int8/bf16 casts are exact;
    # only weight/activation rounding contributes error.
    prepped_bf16 = prepare_params(params)                       # bf16 default
    out = nnue_forward(p1_board, p2_board, prepped_bf16)
    out = jax.block_until_ready(out)
    assert out.shape == (B, 1)
    assert jnp.allclose(out, ref, atol=5e-2, rtol=5e-2)

    # f32 MXU-operand path (near-exact vs reference).
    prepped_f32 = prepare_params(params, compute_dtype=jnp.float32)
    out_f32 = nnue_forward(p1_board, p2_board, prepped_f32)
    out_f32 = jax.block_until_ready(out_f32)
    assert out_f32.shape == (B, 1)
    assert jnp.allclose(out_f32, ref, atol=1e-3, rtol=1e-3)

    print("KERNEL_OK")
</pallas_src>

<mosaic_0001>
module attributes {stable_mosaic.version = 11 : i64} {
  func.func @nnue_kernel(%arg0: i32, %arg1: memref<128x256xi8, #tpu.memory_space<vmem>>, %arg2: memref<128x256xi8, #tpu.memory_space<vmem>>, %arg3: memref<512x256xbf16, #tpu.memory_space<vmem>>, %arg4: memref<512x1xf32, #tpu.memory_space<vmem>>, %arg5: memref<512x256xbf16, #tpu.memory_space<vmem>>, %arg6: memref<512x1xf32, #tpu.memory_space<vmem>>, %arg7: memref<64x512xbf16, #tpu.memory_space<vmem>>, %arg8: memref<64x512xbf16, #tpu.memory_space<vmem>>, %arg9: memref<64x1xf32, #tpu.memory_space<vmem>>, %arg10: memref<64x1xf32, #tpu.memory_space<vmem>>, %arg11: memref<1x1xf32, #tpu.memory_space<vmem>>, %arg12: memref<1x128xf32, #tpu.memory_space<vmem>>) attributes {dimension_semantics = [#tpu.dimension_semantics<parallel>], iteration_bounds = array<i64: 1>, scalar_prefetch = 0 : i64, scratch_operands = 0 : i64, tpu.core_type = #tpu.core_type<tc>, window_params = [{transform_indices = @transform_0, window_bounds = array<i64: 128, 256>}, {transform_indices = @transform_1, window_bounds = array<i64: 128, 256>}, {pipeline_mode = #tpu.pipeline_mode<synchronous>, transform_indices = @transform_2, window_bounds = array<i64: 512, 256>}, {pipeline_mode = #tpu.pipeline_mode<synchronous>, transform_indices = @transform_3, window_bounds = array<i64: 512, 1>}, {pipeline_mode = #tpu.pipeline_mode<synchronous>, transform_indices = @transform_4, window_bounds = array<i64: 512, 256>}, {pipeline_mode = #tpu.pipeline_mode<synchronous>, transform_indices = @transform_5, window_bounds = array<i64: 512, 1>}, {pipeline_mode = #tpu.pipeline_mode<synchronous>, transform_indices = @transform_6, window_bounds = array<i64: 64, 512>}, {pipeline_mode = #tpu.pipeline_mode<synchronous>, transform_indices = @transform_7, window_bounds = array<i64: 64, 512>}, {pipeline_mode = #tpu.pipeline_mode<synchronous>, transform_indices = @transform_8, window_bounds = array<i64: 64, 1>}, {pipeline_mode = #tpu.pipeline_mode<synchronous>, transform_indices = @transform_9, window_bounds = array<i64: 64, 1>}, {pipeline_mode = #tpu.pipeline_mode<synchronous>, transform_indices = @transform_10, window_bounds = array<i64: 1, 1>}, {transform_indices = @transform_11, window_bounds = array<i64: 1, 128>}]} {
    %c0 = arith.constant 0 : index
    %c0_0 = arith.constant 0 : index
    %0 = vector.load %arg1[%c0, %c0_0] : memref<128x256xi8, #tpu.memory_space<vmem>>, vector<128x256xi8>
    %1 = arith.sitofp %0 : vector<128x256xi8> to vector<128x256xf32>
    %2 = arith.truncf %1 : vector<128x256xf32> to vector<128x256xbf16>
    %c0_1 = arith.constant 0 : index
    %c0_2 = arith.constant 0 : index
    %3 = vector.load %arg2[%c0_1, %c0_2] : memref<128x256xi8, #tpu.memory_space<vmem>>, vector<128x256xi8>
    %4 = arith.sitofp %3 : vector<128x256xi8> to vector<128x256xf32>
    %5 = arith.truncf %4 : vector<128x256xf32> to vector<128x256xbf16>
    %c0_3 = arith.constant 0 : index
    %c0_4 = arith.constant 0 : index
    %6 = vector.load %arg3[%c0_3, %c0_4] : memref<512x256xbf16, #tpu.memory_space<vmem>>, vector<512x256xbf16>
    %cst = arith.constant dense<0.000000e+00> : vector<512x128xf32>
    %7 = tpu.matmul %6, %2, %cst {dimension_numbers = #tpu.dot_dimension_numbers<[1], [1], [0], [0], [0, 0, 1, 0], [], []>} : vector<512x256xbf16>, vector<128x256xbf16>, vector<512x128xf32> -> vector<512x128xf32>
    %c0_5 = arith.constant 0 : index
    %c0_6 = arith.constant 0 : index
    %8 = vector.load %arg4[%c0_5, %c0_6] : memref<512x1xf32, #tpu.memory_space<vmem>>, vector<512x1xf32>
    %9 = vector.broadcast %8 : vector<512x1xf32> to vector<512x128xf32>
    %10 = arith.addf %7, %9 : vector<512x128xf32>
    %cst_7 = arith.constant 0.000000e+00 : f32
    %11 = vector.broadcast %cst_7 : f32 to vector<512x128xf32>
    %12 = arith.maximumf %10, %11 : vector<512x128xf32>
    %c0_8 = arith.constant 0 : index
    %c0_9 = arith.constant 0 : index
    %13 = vector.load %arg5[%c0_8, %c0_9] : memref<512x256xbf16, #tpu.memory_space<vmem>>, vector<512x256xbf16>
    %cst_10 = arith.constant dense<0.000000e+00> : vector<512x128xf32>
    %14 = tpu.matmul %13, %5, %cst_10 {dimension_numbers = #tpu.dot_dimension_numbers<[1], [1], [0], [0], [0, 0, 1, 0], [], []>} : vector<512x256xbf16>, vector<128x256xbf16>, vector<512x128xf32> -> vector<512x128xf32>
    %c0_11 = arith.constant 0 : index
    %c0_12 = arith.constant 0 : index
    %15 = vector.load %arg6[%c0_11, %c0_12] : memref<512x1xf32, #tpu.memory_space<vmem>>, vector<512x1xf32>
    %16 = vector.broadcast %15 : vector<512x1xf32> to vector<512x128xf32>
    %17 = arith.addf %14, %16 : vector<512x128xf32>
    %cst_13 = arith.constant 0.000000e+00 : f32
    %18 = vector.broadcast %cst_13 : f32 to vector<512x128xf32>
    %19 = arith.maximumf %17, %18 : vector<512x128xf32>
    %c0_14 = arith.constant 0 : index
    %c0_15 = arith.constant 0 : index
    %20 = vector.load %arg7[%c0_14, %c0_15] : memref<64x512xbf16, #tpu.memory_space<vmem>>, vector<64x512xbf16>
    %21 = arith.truncf %12 : vector<512x128xf32> to vector<512x128xbf16>
    %cst_16 = arith.constant dense<0.000000e+00> : vector<64x128xf32>
    %22 = tpu.matmul %20, %21, %cst_16 {dimension_numbers = #tpu.dot_dimension_numbers<[1], [0], [0], [1], [0, 0, 1, 1], [], []>} : vector<64x512xbf16>, vector<512x128xbf16>, vector<64x128xf32> -> vector<64x128xf32>
    %c0_17 = arith.constant 0 : index
    %c0_18 = arith.constant 0 : index
    %23 = vector.load %arg8[%c0_17, %c0_18] : memref<64x512xbf16, #tpu.memory_space<vmem>>, vector<64x512xbf16>
    %24 = arith.truncf %19 : vector<512x128xf32> to vector<512x128xbf16>
    %cst_19 = arith.constant dense<0.000000e+00> : vector<64x128xf32>
    %25 = tpu.matmul %23, %24, %cst_19 {dimension_numbers = #tpu.dot_dimension_numbers<[1], [0], [0], [1], [0, 0, 1, 1], [], []>} : vector<64x512xbf16>, vector<512x128xbf16>, vector<64x128xf32> -> vector<64x128xf32>
    %26 = arith.addf %22, %25 : vector<64x128xf32>
    %c0_20 = arith.constant 0 : index
    %c0_21 = arith.constant 0 : index
    %27 = vector.load %arg9[%c0_20, %c0_21] : memref<64x1xf32, #tpu.memory_space<vmem>>, vector<64x1xf32>
    %28 = vector.broadcast %27 : vector<64x1xf32> to vector<64x128xf32>
    %29 = arith.addf %26, %28 : vector<64x128xf32>
    %cst_22 = arith.constant 0.000000e+00 : f32
    %30 = vector.broadcast %cst_22 : f32 to vector<64x128xf32>
    %31 = arith.maximumf %29, %30 : vector<64x128xf32>
    %c0_23 = arith.constant 0 : index
    %c0_24 = arith.constant 0 : index
    %32 = vector.load %arg10[%c0_23, %c0_24] : memref<64x1xf32, #tpu.memory_space<vmem>>, vector<64x1xf32>
    %33 = vector.broadcast %32 : vector<64x1xf32> to vector<64x128xf32>
    %34 = arith.mulf %31, %33 : vector<64x128xf32>
    %cst_25 = arith.constant dense<0.000000e+00> : vector<128xf32>
    %35 = vector.multi_reduction <add>, %34, %cst_25 [0] : vector<64x128xf32> to vector<128xf32>
    %36 = vector.shape_cast %35 : vector<128xf32> to vector<1x128xf32>
    %c0_26 = arith.constant 0 : index
    %c0_27 = arith.constant 0 : index
    %37 = vector.load %arg11[%c0_26, %c0_27] : memref<1x1xf32, #tpu.memory_space<vmem>>, vector<1x1xf32>
    %38 = vector.broadcast %37 : vector<1x1xf32> to vector<1x128xf32>
    %39 = arith.addf %36, %38 : vector<1x128xf32>
    %c0_28 = arith.constant 0 : index
    %c0_29 = arith.constant 0 : index
    %40 = vector.load %arg12[%c0_28, %c0_29] : memref<1x128xf32, #tpu.memory_space<vmem>>, vector<1x128xf32>
    tpu.vector_store %arg12[%c0_28, %c0_29], %39 {strides = array<i32>} : memref<1x128xf32, #tpu.memory_space<vmem>>, vector<1x128xf32>,
    return
  }
  func.func @transform_0(%arg0: i32) -> (i32, i32) {
    %c0_i32 = arith.constant 0 : i32
    %c0_i32_0 = arith.constant 0 : i32
    return %arg0, %c0_i32 : i32, i32
  }
  func.func @transform_1(%arg0: i32) -> (i32, i32) {
    %c0_i32 = arith.constant 0 : i32
    %c0_i32_0 = arith.constant 0 : i32
    return %arg0, %c0_i32 : i32, i32
  }
  func.func @transform_2(%arg0: i32) -> (i32, i32) {
    %c0_i32 = arith.constant 0 : i32
    %c0_i32_0 = arith.constant 0 : i32
    %c0_i32_1 = arith.constant 0 : i32
    return %c0_i32, %c0_i32_0 : i32, i32
  }
  func.func @transform_3(%arg0: i32) -> (i32, i32) {
    %c0_i32 = arith.constant 0 : i32
    %c0_i32_0 = arith.constant 0 : i32
    %c0_i32_1 = arith.constant 0 : i32
    return %c0_i32, %c0_i32_0 : i32, i32
  }
  func.func @transform_4(%arg0: i32) -> (i32, i32) {
    %c0_i32 = arith.constant 0 : i32
    %c0_i32_0 = arith.constant 0 : i32
    %c0_i32_1 = arith.constant 0 : i32
    return %c0_i32, %c0_i32_0 : i32, i32
  }
  func.func @transform_5(%arg0: i32) -> (i32, i32) {
    %c0_i32 = arith.constant 0 : i32
    %c0_i32_0 = arith.constant 0 : i32
    %c0_i32_1 = arith.constant 0 : i32
    return %c0_i32, %c0_i32_0 : i32, i32
  }
  func.func @transform_6(%arg0: i32) -> (i32, i32) {
    %c0_i32 = arith.constant 0 : i32
    %c0_i32_0 = arith.constant 0 : i32
    %c0_i32_1 = arith.constant 0 : i32
    return %c0_i32, %c0_i32_0 : i32, i32
  }
  func.func @transform_7(%arg0: i32) -> (i32, i32) {
    %c0_i32 = arith.constant 0 : i32
    %c0_i32_0 = arith.constant 0 : i32
    %c0_i32_1 = arith.constant 0 : i32
    return %c0_i32, %c0_i32_0 : i32, i32
  }
  func.func @transform_8(%arg0: i32) -> (i32, i32) {
    %c0_i32 = arith.constant 0 : i32
    %c0_i32_0 = arith.constant 0 : i32
    %c0_i32_1 = arith.constant 0 : i32
    return %c0_i32, %c0_i32_0 : i32, i32
  }
  func.func @transform_9(%arg0: i32) -> (i32, i32) {
    %c0_i32 = arith.constant 0 : i32
    %c0_i32_0 = arith.constant 0 : i32
    %c0_i32_1 = arith.constant 0 : i32
    return %c0_i32, %c0_i32_0 : i32, i32
  }
  func.func @transform_10(%arg0: i32) -> (i32, i32) {
    %c0_i32 = arith.constant 0 : i32
    %c0_i32_0 = arith.constant 0 : i32
    %c0_i32_1 = arith.constant 0 : i32
    return %c0_i32, %c0_i32_0 : i32, i32
  }
  func.func @transform_11(%arg0: i32) -> (i32, i32) {
    %c0_i32 = arith.constant 0 : i32
    %c0_i32_0 = arith.constant 0 : i32
    return %c0_i32, %arg0 : i32, i32
  }
}

</mosaic_0001>

<bundles_post_ra>
// kernel: tpu_custom_call.1
= control target key start
LH: loop header
LB: loop body
LE: loop exit
PB: predicated region body
PF: predicated region fallthrough
CT: control target
= control target key end

     0   :  { %s5221_s0 = inlined_call_operand.hbm [shape: s8[128,256], index: 0, kind: input, shape index: {}]   ;;  %s5222_s1 = inlined_call_operand.hbm [shape: s8[128,256], index: 1, kind: input, shape index: {}]   ;;  %s5223_s2 = inlined_call_operand.vmem [shape: bf16[512,256], index: 2, kind: input, shape index: {}]   ;;  %s5224_s3 = inlined_call_operand.vmem [shape: f32[512,1], index: 3, kind: input, shape index: {}]   ;;  %s5225_s4 = inlined_call_operand.vmem [shape: bf16[512,256], index: 4, kind: input, shape index: {}]   ;;  %s5226_s5 = inlined_call_operand.vmem [shape: f32[512,1], index: 5, kind: input, shape index: {}]   ;;  %s5227_s6 = inlined_call_operand.vmem [shape: bf16[64,512], index: 6, kind: input, shape index: {}]   ;;  %s5228_s7 = inlined_call_operand.hbm [shape: bf16[64,512], index: 7, kind: input, shape index: {}]   ;;  %s5229_s8 = inlined_call_operand.vmem [shape: f32[64,1], index: 8, kind: input, shape index: {}]   ;;  %s5230_s9 = inlined_call_operand.vmem [shape: f32[64,1], index: 9, kind: input, shape index: {}]   ;;  %s5231_s10 = inlined_call_operand.<no memory space> [shape: f32[1,1], index: 10, kind: input, shape index: {}]   ;;  %s5232_s11 = inlined_call_operand.hbm [shape: f32[1,128], index: 11, kind: output, shape index: {}]  }
   0x1   :  { %v16_v0 = vstv %s5231_s10 }
   0x2   :  { %17 = vst [vmem:[#allocation2] sm:$0x1] %v16_v0 }
   0x3   :  { %18 = vsyncpa [#allocation4], 0 }
   0x4   :  { %19 = vsyncpa [#allocation7], 0 }
   0x5   :  { %20 = vsyncpa [#allocation5], 0  ;;  %s3713_s19 = smov [#allocation6]   ;;  %s3714_s21 = smov [#allocation3]  }
   0x6   :  { %s38_s20 = sshll.u32 %s3713_s19, 4  ;;  %s26_s22 = sshll.u32 %s3714_s21, 4  ;;  %s39_s20 = int_to_ptr.vmem [resolvable:$true] %s38_s20  ;;  %s3783_s22 = int_to_ptr.vmem [resolvable:$true] %s26_s22 }
   0x7   :  { %s3619_s25 = scalar_lea.hbm %s5222_s1, 1024 }
   0x8   :  { %p3620_p0 = scmp.ne.s32.totalorder %s5222_s1, %s3619_s25  ;;  %p3623_p1 = scmp.lt.u32.totalorder %s3619_s25, %s5222_s1 }
   0xa   :  { %p3625_p2 = pnand %p3623_p1, %p3620_p0 }
   0xc   :  { %3628 = shalt.err (!%p3625_p2)
}
   0xd   :  { %s3629_s29 = scalar_lea.vmem %s39_s20, 1024  ;;  %p3634_p4 = scmp.lt.s32.totalorder %s39_s20, %s39_s20 }
   0xe   :  { %p3630_p3 = scmp.ne.s32.totalorder %s39_s20, %s3629_s29  ;;  %p3635_p5 = scmp.lt.s32.totalorder %s3629_s29, %s3629_s29 }
  0x10   :  { %p3636_p6 = por %p3635_p5, %p3634_p4 }
  0x12   :  { %p3637_p7 = pnand %p3636_p6, %p3630_p3 }
  0x14   :  { %3640 = shalt.err (!%p3637_p7)
}
  0x15   :  { %s3715_s30 = smov 256   ;;  %s3716_s12 = smov 16  }
  0x16   :  { %44 = dma.hbm_to_vmem [thread:$0]  %s5222_s1, 1024, %s39_s20, [#allocation7], %s3715_s30, %s3715_s30, %s3716_s12  }
  0x17   :  { %s3641_s17 = scalar_lea.hbm %s5221_s0, 1024 }
  0x18   :  { %p3642_p8 = scmp.ne.s32.totalorder %s5221_s0, %s3641_s17  ;;  %p3645_p9 = scmp.lt.u32.totalorder %s3641_s17, %s5221_s0 }
  0x1a   :  { %p3647_p10 = pnand %p3645_p9, %p3642_p8 }
  0x1c   :  { %3650 = shalt.err (!%p3647_p10)
}
  0x1d   :  { %s3651_s24 = scalar_lea.vmem %s3783_s22, 1024  ;;  %p3656_p12 = scmp.lt.s32.totalorder %s3783_s22, %s3783_s22 }
  0x1e   :  { %p3652_p11 = scmp.ne.s32.totalorder %s3783_s22, %s3651_s24  ;;  %p3657_p13 = scmp.lt.s32.totalorder %s3651_s24, %s3651_s24 }
  0x20   :  { %p3658_p0 = por %p3657_p13, %p3656_p12 }
  0x22   :  { %p3659_p1 = pnand %p3658_p0, %p3652_p11 }
  0x24   :  { %3662 = shalt.err (!%p3659_p1)
}
  0x25   :  { %32 = dma.hbm_to_vmem [thread:$0]  %s5221_s0, 1024, %s3783_s22, [#allocation4], %s3715_s30, %s3715_s30, %s3716_s12  }
  0x26   :  { %s3717_s25 = smov [#allocation8]   ;;  %s3663_s28 = scalar_lea.hbm %s5228_s7, 2048 }
  0x27   :  { %s60_s26 = sshll.u32 %s3717_s25, 4  ;;  %p3664_p2 = scmp.ne.s32.totalorder %s5228_s7, %s3663_s28  ;;  %s61_s26 = int_to_ptr.vmem [resolvable:$true] %s60_s26 }
  0x28   :  { %p3667_p3 = scmp.lt.u32.totalorder %s3663_s28, %s5228_s7 }
  0x2a   :  { %p3669_p4 = pnand %p3667_p3, %p3664_p2 }
  0x2c   :  { %3672 = shalt.err (!%p3669_p4)
}
  0x2d   :  { %s3673_s16 = scalar_lea.vmem %s61_s26, 2048  ;;  %p3678_p6 = scmp.lt.s32.totalorder %s61_s26, %s61_s26 }
  0x2e   :  { %p3674_p5 = scmp.ne.s32.totalorder %s61_s26, %s3673_s16  ;;  %p3679_p7 = scmp.lt.s32.totalorder %s3673_s16, %s3673_s16 }
  0x30   :  { %p3680_p8 = por %p3679_p7, %p3678_p6 }
  0x32   :  { %p3681_p9 = pnand %p3680_p8, %p3674_p5 }
  0x34   :  { %3684 = shalt.err (!%p3681_p9)
}
  0x35   :  { %66 = dma.hbm_to_vmem [thread:$0]  %s5228_s7, 2048, %s61_s26, [#allocation7], %s3715_s30, %s3715_s30, %s3716_s12  }
  0x36   :  { %3707 = dma.done.wait [#allocation4], 1024  }
  0x37   :  { %3708 = vsyncadd [#allocation4], 4294966272 }
  0x38   :  { %3709 = dma.done.wait [#allocation7], 3072  }
  0x39   :  { %3710 = vsyncadd [#allocation7], 4294964224  ;;  %v3718_v1 = vmov 0   ;;  %v197_v2 = vld [vmem:[%s5224_s3 + $0x10] sm:$0xff]  ;;  %v195_v3 = vld [vmem:[%s5224_s3] sm:$0xff] }
  0x3a   :  { %3378 = vset.pattern.permute.xlu1 %v3718_v1  ;;  %3377 = vset.pattern.permute.xlu0 %v3718_v1  ;;  %v84_v4 = vld [vmem:[#allocation3 + $0x8] sm:$0xff]  ;;  %v83_v7 = vld [vmem:[#allocation3] sm:$0xff]  ;;  %v198_v12 = vld [vmem:[%s5224_s3 + $0x18] sm:$0xff] }
  0x3b   :  { %271 = vperm.xlu1 %3378, %v197_v2   ;;  %261 = vperm.xlu0 %3377, %v195_v3   ;;  %v92_v5 = vunpack.c.l.s8.bf16 %v84_v4  ;;  %v108_v6 = vld [vmem:[#allocation6 + $0x8] sm:$0xff]  ;;  %v107_v8 = vld [vmem:[#allocation6] sm:$0xff]  ;;  %v94_v9 = vunpack.c.h.s8.bf16 %v84_v4  ;;  %v91_v11 = vunpack.c.l.s8.bf16 %v83_v7  ;;  %v86_v18 = vld [vmem:[#allocation3 + $0x18] sm:$0xff]  ;;  %v93_v19 = vunpack.c.h.s8.bf16 %v83_v7 }
  0x3c   :  { %v116_v10 = vunpack.c.l.s8.bf16 %v108_v6  ;;  %v118_v13 = vunpack.c.h.s8.bf16 %v108_v6  ;;  %v115_v14 = vunpack.c.l.s8.bf16 %v107_v8  ;;  %v196_v15 = vld [vmem:[%s5224_s3 + $0x8] sm:$0xff]  ;;  %v199_v17 = vld [vmem:[%s5224_s3 + $0x20] sm:$0xff]  ;;  %v117_v21 = vunpack.c.h.s8.bf16 %v107_v8  ;;  %v202_v22 = vld [vmem:[%s5224_s3 + $0x38] sm:$0xff] }
  0x3d   :  { %899 = vmatprep.subr.bf16.mxu0 %v92_v5  ;;  %v200_v16 = vld [vmem:[%s5224_s3 + $0x28] sm:$0xff]  ;;  %v110_v20 = vld [vmem:[#allocation6 + $0x18] sm:$0xff]  ;;  %v96_v23 = vunpack.c.l.s8.bf16 %v86_v18  ;;  %v201_v24 = vld [vmem:[%s5224_s3 + $0x30] sm:$0xff]  ;;  %v98_v34 = vunpack.c.h.s8.bf16 %v86_v18 }
  0x3e   :  { %2020 = vmatprep.subr.bf16.mxu1 %v116_v10  ;;  %900 = vmatpush1.bf16.xpose.msra.mxu0 %v91_v11  ;;  %v120_v25 = vunpack.c.l.s8.bf16 %v110_v20  ;;  %v85_v26 = vld [vmem:[#allocation3 + $0x10] sm:$0xff]  ;;  %v204_v27 = vld [vmem:[%s5224_s3 + $0x48] sm:$0xff]  ;;  %v203_v29 = vld [vmem:[%s5224_s3 + $0x40] sm:$0xff]  ;;  %v122_v36 = vunpack.c.h.s8.bf16 %v110_v20 }
  0x3f   :  { %2021 = vmatpush1.bf16.xpose.msra.mxu1 %v115_v14  ;;  %276 = vperm.xlu1 %3378, %v198_v12   ;;  %v109_v28 = vld [vmem:[#allocation6 + $0x10] sm:$0xff]  ;;  %v95_v30 = vunpack.c.l.s8.bf16 %v85_v26  ;;  %v3381_v32 = vld [vmem:[%s5223_s2 + $0x4] ss:$8 sps:$4 sm:$0xff]   ;;  %v97_v41 = vunpack.c.h.s8.bf16 %v85_v26  ;;  %v90_v60 = vld [vmem:[#allocation3 + $0x38] sm:$0xff] }
  0x40   :  { %266 = vperm.xlu0 %3377, %v196_v15   ;;  %901 = vmatprep.subr.bf16.mxu0 %v94_v9  ;;  %v119_v31 = vunpack.c.l.s8.bf16 %v109_v28  ;;  %v206_v33 = vld [vmem:[%s5224_s3 + $0x58] sm:$0xff]  ;;  %v205_v35 = vld [vmem:[%s5224_s3 + $0x50] sm:$0xff]  ;;  %v3384_v37 = vld [vmem:[%s5225_s4 + $0x4] ss:$8 sps:$4 sm:$0xff]   ;;  %v121_v43 = vunpack.c.h.s8.bf16 %v109_v28  ;;  %v104_v1 = vunpack.c.l.s8.bf16 %v90_v60  ;;  %v106_v11 = vunpack.c.h.s8.bf16 %v90_v60 }
  0x41   :  { %2022 = vmatprep.subr.bf16.mxu1 %v118_v13  ;;  %931 = vmatprep.mubr.bf16.mxu0 %v3381_v32  ;;  %v208_v38 = vld [vmem:[%s5224_s3 + $0x68] sm:$0xff]  ;;  %v207_v39 = vld [vmem:[%s5224_s3 + $0x60] sm:$0xff]  ;;  %v210_v44 = vld [vmem:[%s5224_s3 + $0x78] sm:$0xff] }
  0x42   :  { %v88_v40 = vld [vmem:[#allocation3 + $0x28] sm:$0xff]  ;;  %2052 = vmatprep.mubr.bf16.mxu1 %v3384_v37  ;;  %v87_v48 = vld [vmem:[#allocation3 + $0x20] sm:$0xff]  ;;  %v214_v54 = vld [vmem:[%s5224_s3 + $0x98] sm:$0xff] }
  0x43   :  { %286 = vperm.xlu1 %3378, %v200_v16   ;;  %v112_v42 = vld [vmem:[#allocation6 + $0x28] sm:$0xff]  ;;  %v100_v45 = vunpack.c.l.s8.bf16 %v88_v40  ;;  %v111_v50 = vld [vmem:[#allocation6 + $0x20] sm:$0xff]  ;;  %v99_v52 = vunpack.c.l.s8.bf16 %v87_v48  ;;  %v102_v55 = vunpack.c.h.s8.bf16 %v88_v40  ;;  %v101_v61 = vunpack.c.h.s8.bf16 %v87_v48  ;;  %v114_v62 = vld [vmem:[#allocation6 + $0x38] sm:$0xff] }
  0x44   :  { %281 = vperm.xlu0 %3377, %v199_v17   ;;  %v209_v46 = vld [vmem:[%s5224_s3 + $0x70] sm:$0xff]  ;;  %v124_v47 = vunpack.c.l.s8.bf16 %v112_v42  ;;  %v212_v49 = vld [vmem:[%s5224_s3 + $0x88] sm:$0xff]  ;;  %v211_v51 = vld [vmem:[%s5224_s3 + $0x80] sm:$0xff]  ;;  %v123_v53 = vunpack.c.l.s8.bf16 %v111_v50  ;;  %v126_v57 = vunpack.c.h.s8.bf16 %v112_v42  ;;  %v125_v63 = vunpack.c.h.s8.bf16 %v111_v50 }
  0x45   :  { %v213_v56 = vld [vmem:[%s5224_s3 + $0x90] sm:$0xff]  ;;  %v216_v58 = vld [vmem:[%s5224_s3 + $0xa8] sm:$0xff]  ;;  %v215_v59 = vld [vmem:[%s5224_s3 + $0xa0] sm:$0xff]  ;;  %v128_v3 = vunpack.c.l.s8.bf16 %v114_v62  ;;  %v130_v13 = vunpack.c.h.s8.bf16 %v114_v62 }
  0x46   :  { %902 = vmatpush1.bf16.xpose.msra.mxu0 %v93_v19  ;;  %v218_v0 = vld [vmem:[%s5224_s3 + $0xb8] sm:$0xff]  ;;  %v217_v2 = vld [vmem:[%s5224_s3 + $0xb0] sm:$0xff]  ;;  %v220_v5 = vld [vmem:[%s5224_s3 + $0xc8] sm:$0xff] }
  0x47   :  { %2023 = vmatpush1.bf16.xpose.msra.mxu1 %v117_v21  ;;  %296 = vperm.xlu1 %3378, %v202_v22   ;;  %v89_v4 = vld [vmem:[#allocation3 + $0x30] sm:$0xff]  ;;  %v219_v7 = vld [vmem:[%s5224_s3 + $0xc0] sm:$0xff]  ;;  %v224_v14 = vld [vmem:[%s5224_s3 + $0xe8] sm:$0xff] }
  0x48   :  { %291 = vperm.xlu0 %3377, %v201_v24   ;;  %903 = vmatprep.subr.bf16.mxu0 %v96_v23  ;;  %v113_v6 = vld [vmem:[#allocation6 + $0x30] sm:$0xff]  ;;  %v103_v8 = vunpack.c.l.s8.bf16 %v89_v4  ;;  %v223_v15 = vld [vmem:[%s5224_s3 + $0xe0] sm:$0xff]  ;;  %v105_v16 = vunpack.c.h.s8.bf16 %v89_v4  ;;  %v228_v20 = vld [vmem:[%s5224_s3 + $0x108] sm:$0xff] }
  0x49   :  { %2024 = vmatprep.subr.bf16.mxu1 %v120_v25  ;;  %v127_v9 = vunpack.c.l.s8.bf16 %v113_v6  ;;  %v222_v10 = vld [vmem:[%s5224_s3 + $0xd8] sm:$0xff]  ;;  %v221_v12 = vld [vmem:[%s5224_s3 + $0xd0] sm:$0xff]  ;;  %v129_v17 = vunpack.c.h.s8.bf16 %v113_v6  ;;  %v227_v21 = vld [vmem:[%s5224_s3 + $0x100] sm:$0xff] }
  0x4a   :  { %v226_v18 = vld [vmem:[%s5224_s3 + $0xf8] sm:$0xff]  ;;  %v225_v19 = vld [vmem:[%s5224_s3 + $0xf0] sm:$0xff]  ;;  %v3379_v22 = vld [vmem:[%s5223_s2] ss:$8 sps:$4 sm:$0xff]  }
  0x4b   :  { %306 = vperm.xlu1 %3378, %v204_v27   ;;  %v3382_v23 = vld [vmem:[%s5225_s4] ss:$8 sps:$4 sm:$0xff]   ;;  %v3385_v24 = vld [vmem:[%s5223_s2 + $0x14] ss:$8 sps:$4 sm:$0xff]   ;;  %v3391_v32 = vld [vmem:[%s5223_s2 + $0x24] ss:$8 sps:$4 sm:$0xff]  }
  0x4c   :  { %301 = vperm.xlu0 %3377, %v203_v29   ;;  %v3387_v25 = vld [vmem:[%s5225_s4 + $0x14] ss:$8 sps:$4 sm:$0xff]   ;;  %v232_v28 = vld [vmem:[%s5224_s3 + $0x128] sm:$0xff]  ;;  %v231_v29 = vld [vmem:[%s5224_s3 + $0x120] sm:$0xff] }
  0x4d   :  { %v230_v26 = vld [vmem:[%s5224_s3 + $0x118] sm:$0xff]  ;;  %v229_v27 = vld [vmem:[%s5224_s3 + $0x110] sm:$0xff]  ;;  %v235_v37 = vld [vmem:[%s5224_s3 + $0x140] sm:$0xff] }
  0x4e   :  { %904 = vmatpush1.bf16.xpose.msra.mxu0 %v95_v30  ;;  %v3389_v30 = vld [vmem:[%s5223_s2 + $0x10] ss:$8 sps:$4 sm:$0xff]   ;;  %v3397_v40 = vld [vmem:[%s5223_s2 + $0x34] ss:$8 sps:$4 sm:$0xff]   ;;  %v3403_v48 = vld [vmem:[%s5223_s2 + $0x44] ss:$8 sps:$4 sm:$0xff]  }
  0x4f   :  { %2025 = vmatpush1.bf16.xpose.msra.mxu1 %v119_v31  ;;  %316 = vperm.xlu1 %3378, %v206_v33   ;;  %v3390_v31 = vld [vmem:[%s5225_s4 + $0x10] ss:$8 sps:$4 sm:$0xff]   ;;  %v3393_v33 = vld [vmem:[%s5225_s4 + $0x24] ss:$8 sps:$4 sm:$0xff]   ;;  %v3419_v6 = vld [vmem:[%s5223_s2 + $0x60] ss:$8 sps:$4 sm:$0xff]  }
  0x50   :  { %311 = vperm.xlu0 %3377, %v205_v35   ;;  %905 = vmatprep.subr.bf16.mxu0 %v98_v34  ;;  %v234_v34 = vld [vmem:[%s5224_s3 + $0x138] sm:$0xff]  ;;  %v233_v35 = vld [vmem:[%s5224_s3 + $0x130] sm:$0xff]  ;;  %v1316_v50 = vld [vmem:[%s5226_s5] sm:$0xff] }
  0x51   :  { %2026 = vmatprep.subr.bf16.mxu1 %v122_v36  ;;  %v236_v36 = vld [vmem:[%s5224_s3 + $0x148] sm:$0xff]  ;;  %v238_v42 = vld [vmem:[%s5224_s3 + $0x158] sm:$0xff]  ;;  %v1334_v60 = vld [vmem:[%s5226_s5 + $0x90] sm:$0xff] }
  0x52   :  { %v3413_v62 = vld [vmem:[%s5223_s2 + $0x50] ss:$8 sps:$4 sm:$0xff]  }
  0x53   :  { %326 = vperm.xlu1 %3378, %v208_v38   ;;  %v3395_v38 = vld [vmem:[%s5223_s2 + $0x20] ss:$8 sps:$4 sm:$0xff]   ;;  %v1366_v4 = vld [vmem:[%s5226_s5 + $0x190] sm:$0xff] }
  0x54   :  { %321 = vperm.xlu0 %3377, %v207_v39   ;;  %v3396_v39 = vld [vmem:[%s5225_s4 + $0x20] ss:$8 sps:$4 sm:$0xff]  }
  0x56   :  { %906 = vmatpush1.bf16.xpose.msra.mxu0 %v97_v41  ;;  %v3399_v41 = vld [vmem:[%s5225_s4 + $0x34] ss:$8 sps:$4 sm:$0xff]  }
  0x57   :  { %2027 = vmatpush1.bf16.xpose.msra.mxu1 %v121_v43  ;;  %336 = vperm.xlu1 %3378, %v210_v44   ;;  %v237_v43 = vld [vmem:[%s5224_s3 + $0x150] sm:$0xff]  ;;  %v1332_v44 = vld [vmem:[%s5226_s5 + $0x80] sm:$0xff] }
  0x58   :  { %331 = vperm.xlu0 %3377, %v209_v46   ;;  %907 = vmatprep.subr.bf16.mxu0 %v100_v45  ;;  %v239_v45 = vld [vmem:[%s5224_s3 + $0x160] sm:$0xff]  ;;  %v3401_v46 = vld [vmem:[%s5223_s2 + $0x30] ss:$8 sps:$4 sm:$0xff]  }
  0x59   :  { %2028 = vmatprep.subr.bf16.mxu1 %v124_v47  ;;  %v3402_v47 = vld [vmem:[%s5225_s4 + $0x30] ss:$8 sps:$4 sm:$0xff]  }
  0x5b   :  { %346 = vperm.xlu1 %3378, %v212_v49   ;;  %v3405_v49 = vld [vmem:[%s5225_s4 + $0x44] ss:$8 sps:$4 sm:$0xff]  }
  0x5c   :  { %341 = vperm.xlu0 %3377, %v211_v51   ;;  %v1333_v51 = vld [vmem:[%s5226_s5 + $0x88] sm:$0xff] }
  0x5e   :  { %908 = vmatpush1.bf16.xpose.msra.mxu0 %v99_v52  ;;  %v1364_v52 = vld [vmem:[%s5226_s5 + $0x180] sm:$0xff] }
  0x5f   :  { %2029 = vmatpush1.bf16.xpose.msra.mxu1 %v123_v53  ;;  %356 = vperm.xlu1 %3378, %v214_v54   ;;  %v1317_v53 = vld [vmem:[%s5226_s5 + $0x8] sm:$0xff] }
  0x60   :  { %351 = vperm.xlu0 %3377, %v213_v56   ;;  %909 = vmatprep.subr.bf16.mxu0 %v102_v55  ;;  %v3407_v54 = vld [vmem:[%s5223_s2 + $0x40] ss:$8 sps:$4 sm:$0xff]   ;;  %v3409_v56 = vld [vmem:[%s5223_s2 + $0x54] ss:$8 sps:$4 sm:$0xff]  }
  0x61   :  { %2030 = vmatprep.subr.bf16.mxu1 %v126_v57  ;;  %v3408_v55 = vld [vmem:[%s5225_s4 + $0x40] ss:$8 sps:$4 sm:$0xff]   ;;  %v3411_v57 = vld [vmem:[%s5225_s4 + $0x54] ss:$8 sps:$4 sm:$0xff]  }
  0x63   :  { %366 = vperm.xlu1 %3378, %v216_v58   ;;  %v1348_v58 = vld [vmem:[%s5226_s5 + $0x100] sm:$0xff] }
  0x64   :  { %361 = vperm.xlu0 %3377, %v215_v59   ;;  %v1365_v59 = vld [vmem:[%s5226_s5 + $0x188] sm:$0xff] }
  0x66   :  { %910 = vmatpush1.bf16.xpose.msra.mxu0 %v101_v61  ;;  %v1349_v61 = vld [vmem:[%s5226_s5 + $0x108] sm:$0xff] }
  0x67   :  { %2031 = vmatpush1.bf16.xpose.msra.mxu1 %v125_v63  ;;  %376 = vperm.xlu1 %3378, %v218_v0   ;;  %v3414_v63 = vld [vmem:[%s5225_s4 + $0x50] ss:$8 sps:$4 sm:$0xff]   ;;  %v3415_v0 = vld [vmem:[%s5223_s2 + $0x64] ss:$8 sps:$4 sm:$0xff]  }
  0x68   :  { %371 = vperm.xlu0 %3377, %v217_v2   ;;  %911 = vmatprep.subr.bf16.mxu0 %v104_v1  ;;  %v3417_v1 = vld [vmem:[%s5225_s4 + $0x64] ss:$8 sps:$4 sm:$0xff]   ;;  %v1318_v2 = vld [vmem:[%s5226_s5 + $0x10] sm:$0xff] }
  0x69   :  { %2032 = vmatprep.subr.bf16.mxu1 %v128_v3  ;;  %v1335_v3 = vld [vmem:[%s5226_s5 + $0x98] sm:$0xff] }
  0x6b   :  { %386 = vperm.xlu1 %3378, %v220_v5   ;;  %v1319_v5 = vld [vmem:[%s5226_s5 + $0x18] sm:$0xff] }
  0x6c   :  { %381 = vperm.xlu0 %3377, %v219_v7   ;;  %v3420_v7 = vld [vmem:[%s5225_s4 + $0x60] ss:$8 sps:$4 sm:$0xff]  }
  0x6e   :  { %912 = vmatpush1.bf16.xpose.msra.mxu0 %v103_v8  ;;  %v3421_v8 = vld [vmem:[%s5223_s2 + $0x74] ss:$8 sps:$4 sm:$0xff]  }
  0x6f   :  { %2033 = vmatpush1.bf16.xpose.msra.mxu1 %v127_v9  ;;  %396 = vperm.xlu1 %3378, %v222_v10   ;;  %v3423_v9 = vld [vmem:[%s5225_s4 + $0x74] ss:$8 sps:$4 sm:$0xff]  }
  0x70   :  { %391 = vperm.xlu0 %3377, %v221_v12   ;;  %913 = vmatprep.subr.bf16.mxu0 %v106_v11  ;;  %v1350_v10 = vld [vmem:[%s5226_s5 + $0x110] sm:$0xff]  ;;  %v1367_v11 = vld [vmem:[%s5226_s5 + $0x198] sm:$0xff]  ;;  %v1336_v12 = vld [vmem:[%s5226_s5 + $0xa0] sm:$0xff] }
  0x71   :  { %2034 = vmatprep.subr.bf16.mxu1 %v130_v13  ;;  %v1351_v13 = vld [vmem:[%s5226_s5 + $0x118] sm:$0xff] }
  0x73   :  { %406 = vperm.xlu1 %3378, %v224_v14   ;;  %v3425_v14 = vld [vmem:[%s5223_s2 + $0x70] ss:$8 sps:$4 sm:$0xff]  }
  0x74   :  { %401 = vperm.xlu0 %3377, %v223_v15   ;;  %v3426_v15 = vld [vmem:[%s5225_s4 + $0x70] ss:$8 sps:$4 sm:$0xff]  }
  0x76   :  { %914 = vmatpush1.bf16.xpose.msra.mxu0 %v105_v16  ;;  %v3427_v16 = vld [vmem:[%s5223_s2 + $0x84] ss:$8 sps:$4 sm:$0xff]  }
  0x77   :  { %2035 = vmatpush1.bf16.xpose.msra.mxu1 %v129_v17  ;;  %416 = vperm.xlu1 %3378, %v226_v18   ;;  %v3429_v17 = vld [vmem:[%s5225_s4 + $0x84] ss:$8 sps:$4 sm:$0xff]  }
  0x78   :  { %411 = vperm.xlu0 %3377, %v225_v19   ;;  %v1320_v18 = vld [vmem:[%s5226_s5 + $0x20] sm:$0xff]  ;;  %v1337_v19 = vld [vmem:[%s5226_s5 + $0xa8] sm:$0xff] }
  0x7b   :  { %426 = vperm.xlu1 %3378, %v228_v20   ;;  %v1368_v20 = vld [vmem:[%s5226_s5 + $0x1a0] sm:$0xff] }
  0x7c   :  { %421 = vperm.xlu0 %3377, %v227_v21   ;;  %v1321_v21 = vld [vmem:[%s5226_s5 + $0x28] sm:$0xff] }
  0x7d   :  { %932 = vmatmul.mubr.bf16.vlgmr.msra.gmra.mrb[0].mxu0 %v3379_v22  ;;  %v3431_v22 = vld [vmem:[%s5223_s2 + $0x80] ss:$8 sps:$4 sm:$0xff]  }
  0x7e   :  { %2053 = vmatmul.mubr.bf16.vlgmr.msra.gmra.mrb[0].mxu1 %v3382_v23  ;;  %939 = vmatprep.mubr.bf16.mxu0 %v3385_v24  ;;  %v3432_v23 = vld [vmem:[%s5225_s4 + $0x80] ss:$8 sps:$4 sm:$0xff]   ;;  %v3433_v24 = vld [vmem:[%s5223_s2 + $0x94] ss:$8 sps:$4 sm:$0xff]  }
  0x7f   :  { %436 = vperm.xlu1 %3378, %v230_v26   ;;  %2060 = vmatprep.mubr.bf16.mxu1 %v3387_v25 }
  0x80   :  { %431 = vperm.xlu0 %3377, %v229_v27   ;;  %v3435_v27 = vld [vmem:[%s5225_s4 + $0x94] ss:$8 sps:$4 sm:$0xff]  }
  0x83   :  { %446 = vperm.xlu1 %3378, %v232_v28   ;;  %v1352_v28 = vld [vmem:[%s5226_s5 + $0x120] sm:$0xff] }
  0x84   :  { %441 = vperm.xlu0 %3377, %v231_v29   ;;  %v1369_v29 = vld [vmem:[%s5226_s5 + $0x1a8] sm:$0xff] }
  0x85   :  { %940 = vmatmul.mubr.bf16.gmra.mrb[4].mxu0 %v3389_v30 }
  0x86   :  { %2061 = vmatmul.mubr.bf16.gmra.mrb[4].mxu1 %v3390_v31  ;;  %947 = vmatprep.mubr.bf16.mxu0 %v3391_v32  ;;  %v1338_v31 = vld [vmem:[%s5226_s5 + $0xb0] sm:$0xff] }
  0x87   :  { %456 = vperm.xlu1 %3378, %v234_v34   ;;  %2068 = vmatprep.mubr.bf16.mxu1 %v3393_v33  ;;  %v1353_v33 = vld [vmem:[%s5226_s5 + $0x128] sm:$0xff]  ;;  %v3437_v34 = vld [vmem:[%s5223_s2 + $0x90] ss:$8 sps:$4 sm:$0xff]  }
  0x88   :  { %451 = vperm.xlu0 %3377, %v233_v35  }
  0x8b   :  { %466 = vperm.xlu1 %3378, %v236_v36   ;;  %v3438_v36 = vld [vmem:[%s5225_s4 + $0x90] ss:$8 sps:$4 sm:$0xff]  }
  0x8c   :  { %461 = vperm.xlu0 %3377, %v235_v37   ;;  %v3439_v37 = vld [vmem:[%s5223_s2 + $0xa4] ss:$8 sps:$4 sm:$0xff]  }
  0x8d   :  { %948 = vmatmul.mubr.bf16.gmra.mrb[8].mxu0 %v3395_v38 }
  0x8e   :  { %2069 = vmatmul.mubr.bf16.gmra.mrb[8].mxu1 %v3396_v39  ;;  %955 = vmatprep.mubr.bf16.mxu0 %v3397_v40  ;;  %v3441_v39 = vld [vmem:[%s5225_s4 + $0xa4] ss:$8 sps:$4 sm:$0xff]   ;;  %v1322_v40 = vld [vmem:[%s5226_s5 + $0x30] sm:$0xff] }
  0x8f   :  { %476 = vperm.xlu1 %3378, %v238_v42   ;;  %2076 = vmatprep.mubr.bf16.mxu1 %v3399_v41  ;;  %v1339_v41 = vld [vmem:[%s5226_s5 + $0xb8] sm:$0xff] }
  0x90   :  { %471 = vperm.xlu0 %3377, %v237_v43  }
  0x93   :  { %1462 = vperm.xlu1 %3378, %v1332_v44   ;;  %v1370_v44 = vld [vmem:[%s5226_s5 + $0x1b0] sm:$0xff] }
  0x94   :  { %481 = vperm.xlu0 %3377, %v239_v45   ;;  %v1323_v45 = vld [vmem:[%s5226_s5 + $0x38] sm:$0xff] }
  0x95   :  { %956 = vmatmul.mubr.bf16.gmra.mrb[12].mxu0 %v3401_v46  ;;  %v3443_v46 = vld [vmem:[%s5223_s2 + $0xa0] ss:$8 sps:$4 sm:$0xff]  }
  0x96   :  { %2077 = vmatmul.mubr.bf16.gmra.mrb[12].mxu1 %v3402_v47  ;;  %963 = vmatprep.mubr.bf16.mxu0 %v3403_v48  ;;  %v3444_v48 = vld [vmem:[%s5225_s4 + $0xa0] ss:$8 sps:$4 sm:$0xff]  }
  0x97   :  { %1382 = vperm.xlu1 %3378, %v1316_v50   ;;  %2084 = vmatprep.mubr.bf16.mxu1 %v3405_v49  ;;  %v3445_v49 = vld [vmem:[%s5223_s2 + $0xb4] ss:$8 sps:$4 sm:$0xff]  }
  0x98   :  { %1467 = vperm.xlu0 %3377, %v1333_v51   ;;  %v3447_v51 = vld [vmem:[%s5225_s4 + $0xb4] ss:$8 sps:$4 sm:$0xff]  }
  0x9b   :  { %1622 = vperm.xlu1 %3378, %v1364_v52   ;;  %v1354_v52 = vld [vmem:[%s5226_s5 + $0x130] sm:$0xff] }
  0x9c   :  { %1387 = vperm.xlu0 %3377, %v1317_v53   ;;  %v1371_v53 = vld [vmem:[%s5226_s5 + $0x1b8] sm:$0xff] }
  0x9d   :  { %964 = vmatmul.mubr.bf16.gmra.mrb[16].mxu0 %v3407_v54 }
  0x9e   :  { %2085 = vmatmul.mubr.bf16.gmra.mrb[16].mxu1 %v3408_v55  ;;  %971 = vmatprep.mubr.bf16.mxu0 %v3409_v56  ;;  %v1340_v56 = vld [vmem:[%s5226_s5 + $0xc0] sm:$0xff] }
  0x9f   :  { %1542 = vperm.xlu1 %3378, %v1348_v58   ;;  %2092 = vmatprep.mubr.bf16.mxu1 %v3411_v57  ;;  %v1355_v57 = vld [vmem:[%s5226_s5 + $0x138] sm:$0xff] }
  0xa0   :  { %1627 = vperm.xlu0 %3377, %v1365_v59   ;;  %v3449_v58 = vld [vmem:[%s5223_s2 + $0xb0] ss:$8 sps:$4 sm:$0xff]  }
  0xa3   :  { %1472 = vperm.xlu1 %3378, %v1334_v60   ;;  %v3450_v60 = vld [vmem:[%s5225_s4 + $0xb0] ss:$8 sps:$4 sm:$0xff]  }
  0xa4   :  { %1547 = vperm.xlu0 %3377, %v1349_v61   ;;  %v3451_v61 = vld [vmem:[%s5223_s2 + $0xc4] ss:$8 sps:$4 sm:$0xff]  }
  0xa5   :  { %972 = vmatmul.mubr.bf16.gmra.mrb[20].mxu0 %v3413_v62 }
  0xa6   :  { %2093 = vmatmul.mubr.bf16.gmra.mrb[20].mxu1 %v3414_v63  ;;  %979 = vmatprep.mubr.bf16.mxu0 %v3415_v0  ;;  %v3453_v63 = vld [vmem:[%s5225_s4 + $0xc4] ss:$8 sps:$4 sm:$0xff]  }
  0xa7   :  { %1392 = vperm.xlu1 %3378, %v1318_v2   ;;  %2100 = vmatprep.mubr.bf16.mxu1 %v3417_v1  ;;  %v1324_v0 = vld [vmem:[%s5226_s5 + $0x40] sm:$0xff]  ;;  %v1341_v1 = vld [vmem:[%s5226_s5 + $0xc8] sm:$0xff] }
  0xa8   :  { %1477 = vperm.xlu0 %3377, %v1335_v3  }
  0xab   :  { %1632 = vperm.xlu1 %3378, %v1366_v4   ;;  %v1372_v4 = vld [vmem:[%s5226_s5 + $0x1c0] sm:$0xff] }
  0xac   :  { %1397 = vperm.xlu0 %3377, %v1319_v5   ;;  %v1325_v5 = vld [vmem:[%s5226_s5 + $0x48] sm:$0xff] }
  0xad   :  { %980 = vmatmul.mubr.bf16.gmra.mrb[24].mxu0 %v3419_v6  ;;  %v3455_v6 = vld [vmem:[%s5223_s2 + $0xc0] ss:$8 sps:$4 sm:$0xff]  }
  0xae   :  { %2101 = vmatmul.mubr.bf16.gmra.mrb[24].mxu1 %v3420_v7  ;;  %987 = vmatprep.mubr.bf16.mxu0 %v3421_v8  ;;  %v3456_v8 = vld [vmem:[%s5225_s4 + $0xc0] ss:$8 sps:$4 sm:$0xff]  }
  0xaf   :  { %1552 = vperm.xlu1 %3378, %v1350_v10   ;;  %2108 = vmatprep.mubr.bf16.mxu1 %v3423_v9  ;;  %v3457_v9 = vld [vmem:[%s5223_s2 + $0xd4] ss:$8 sps:$4 sm:$0xff]  }
  0xb0   :  { %1637 = vperm.xlu0 %3377, %v1367_v11   ;;  %v3459_v11 = vld [vmem:[%s5225_s4 + $0xd4] ss:$8 sps:$4 sm:$0xff]  }
  0xb3   :  { %1482 = vperm.xlu1 %3378, %v1336_v12   ;;  %v1356_v12 = vld [vmem:[%s5226_s5 + $0x140] sm:$0xff] }
  0xb4   :  { %1557 = vperm.xlu0 %3377, %v1351_v13   ;;  %v1373_v13 = vld [vmem:[%s5226_s5 + $0x1c8] sm:$0xff] }
  0xb5   :  { %988 = vmatmul.mubr.bf16.gmra.mrb[28].mxu0 %v3425_v14 }
  0xb6   :  { %2109 = vmatmul.mubr.bf16.gmra.mrb[28].mxu1 %v3426_v15  ;;  %995 = vmatprep.mubr.bf16.mxu0 %v3427_v16  ;;  %v1342_v16 = vld [vmem:[%s5226_s5 + $0xd0] sm:$0xff] }
  0xb7   :  { %1402 = vperm.xlu1 %3378, %v1320_v18   ;;  %2116 = vmatprep.mubr.bf16.mxu1 %v3429_v17  ;;  %v1357_v17 = vld [vmem:[%s5226_s5 + $0x148] sm:$0xff]  ;;  %v3461_v18 = vld [vmem:[%s5223_s2 + $0xd0] ss:$8 sps:$4 sm:$0xff]  }
  0xb8   :  { %1487 = vperm.xlu0 %3377, %v1337_v19  }
  0xba   :  { %v4144_v25 = vpop.permute.xlu1 %271  ;;  %v4146_v26 = vpop.permute.xlu0 %261 }
  0xbb   :  { %1642 = vperm.xlu1 %3378, %v1368_v20   ;;  %v3462_v20 = vld [vmem:[%s5225_s4 + $0xd0] ss:$8 sps:$4 sm:$0xff]  }
  0xbc   :  { %1407 = vperm.xlu0 %3377, %v1321_v21   ;;  %v3463_v21 = vld [vmem:[%s5223_s2 + $0xe4] ss:$8 sps:$4 sm:$0xff]  }
  0xbd   :  { %996 = vmatmul.mubr.bf16.gmra.mrb[32].mxu0 %v3431_v22 }
  0xbe   :  { %2117 = vmatmul.mubr.bf16.gmra.mrb[32].mxu1 %v3432_v23  ;;  %v4157_v30 = vpop.permute.xlu1 %276  ;;  %1003 = vmatprep.mubr.bf16.mxu0 %v3433_v24  ;;  %v3465_v23 = vld [vmem:[%s5225_s4 + $0xe4] ss:$8 sps:$4 sm:$0xff]   ;;  %v1326_v24 = vld [vmem:[%s5226_s5 + $0x50] sm:$0xff] }
  0xbf   :  { %v4162_v32 = vpop.permute.xlu0 %266  ;;  %1562 = vperm.xlu1 %3378, %v1352_v28   ;;  %2124 = vmatprep.mubr.bf16.mxu1 %v3435_v27  ;;  %v1343_v27 = vld [vmem:[%s5226_s5 + $0xd8] sm:$0xff] }
  0xc0   :  { %1647 = vperm.xlu0 %3377, %v1369_v29  }
  0xc2   :  { %v4170_v35 = vpop.permute.xlu1 %286 }
  0xc3   :  { %v4178_v38 = vpop.permute.xlu0 %281  ;;  %1492 = vperm.xlu1 %3378, %v1338_v31   ;;  %v1374_v31 = vld [vmem:[%s5226_s5 + $0x1d0] sm:$0xff] }
  0xc4   :  { %1567 = vperm.xlu0 %3377, %v1353_v33   ;;  %v1327_v33 = vld [vmem:[%s5226_s5 + $0x58] sm:$0xff] }
  0xc5   :  { %1004 = vmatmul.mubr.bf16.gmra.mrb[36].mxu0 %v3437_v34  ;;  %v3467_v34 = vld [vmem:[%s5223_s2 + $0xe0] ss:$8 sps:$4 sm:$0xff]  }
  0xc6   :  { %2125 = vmatmul.mubr.bf16.gmra.mrb[36].mxu1 %v3438_v36  ;;  %v4189_v42 = vpop.permute.xlu1 %296  ;;  %1011 = vmatprep.mubr.bf16.mxu0 %v3439_v37  ;;  %v3468_v37 = vld [vmem:[%s5225_s4 + $0xe0] ss:$8 sps:$4 sm:$0xff]  }
  0xc7   :  { %v4191_v43 = vpop.permute.xlu0 %291  ;;  %1412 = vperm.xlu1 %3378, %v1322_v40   ;;  %2132 = vmatprep.mubr.bf16.mxu1 %v3441_v39  ;;  %v3469_v39 = vld [vmem:[%s5223_s2 + $0xf4] ss:$8 sps:$4 sm:$0xff]  }
  0xc8   :  { %1497 = vperm.xlu0 %3377, %v1339_v41   ;;  %v3471_v41 = vld [vmem:[%s5225_s4 + $0xf4] ss:$8 sps:$4 sm:$0xff]  }
  0xca   :  { %v4202_v47 = vpop.permute.xlu1 %306 }
  0xcb   :  { %v4210_v50 = vpop.permute.xlu0 %301  ;;  %1652 = vperm.xlu1 %3378, %v1370_v44   ;;  %v1358_v44 = vld [vmem:[%s5226_s5 + $0x150] sm:$0xff] }
  0xcc   :  { %1417 = vperm.xlu0 %3377, %v1323_v45   ;;  %v1375_v45 = vld [vmem:[%s5226_s5 + $0x1d8] sm:$0xff] }
  0xcd   :  { %1012 = vmatmul.mubr.bf16.gmra.mrb[40].mxu0 %v3443_v46 }
  0xce   :  { %2133 = vmatmul.mubr.bf16.gmra.mrb[40].mxu1 %v3444_v48  ;;  %v4221_v54 = vpop.permute.xlu1 %316  ;;  %1019 = vmatprep.mubr.bf16.mxu0 %v3445_v49  ;;  %v1344_v49 = vld [vmem:[%s5226_s5 + $0xe0] sm:$0xff] }
  0xcf   :  { %v4223_v55 = vpop.permute.xlu0 %311  ;;  %1572 = vperm.xlu1 %3378, %v1354_v52   ;;  %2140 = vmatprep.mubr.bf16.mxu1 %v3447_v51  ;;  %v1359_v51 = vld [vmem:[%s5226_s5 + $0x158] sm:$0xff] }
  0xd0   :  { %1657 = vperm.xlu0 %3377, %v1371_v53   ;;  %v3473_v52 = vld [vmem:[%s5223_s2 + $0xf0] ss:$8 sps:$4 sm:$0xff]  }
  0xd2   :  { %v4234_v59 = vpop.permute.xlu1 %326 }
  0xd3   :  { %v4242_v62 = vpop.permute.xlu0 %321  ;;  %1502 = vperm.xlu1 %3378, %v1340_v56   ;;  %v3474_v56 = vld [vmem:[%s5225_s4 + $0xf0] ss:$8 sps:$4 sm:$0xff]  }
  0xd4   :  { %1577 = vperm.xlu0 %3377, %v1355_v57   ;;  %v3475_v57 = vld [vmem:[%s5223_s2 + $0x104] ss:$8 sps:$4 sm:$0xff]  }
  0xd5   :  { %1020 = vmatmul.mubr.bf16.gmra.mrb[44].mxu0 %v3449_v58 }
  0xd6   :  { %2141 = vmatmul.mubr.bf16.gmra.mrb[44].mxu1 %v3450_v60  ;;  %v4253_v2 = vpop.permute.xlu1 %336  ;;  %1027 = vmatprep.mubr.bf16.mxu0 %v3451_v61  ;;  %v3477_v60 = vld [vmem:[%s5225_s4 + $0x104] ss:$8 sps:$4 sm:$0xff]  }
  0xd7   :  { %v4255_v3 = vpop.permute.xlu0 %331  ;;  %1422 = vperm.xlu1 %3378, %v1324_v0   ;;  %2148 = vmatprep.mubr.bf16.mxu1 %v3453_v63  ;;  %v1328_v61 = vld [vmem:[%s5226_s5 + $0x60] sm:$0xff]  ;;  %v1345_v63 = vld [vmem:[%s5226_s5 + $0xe8] sm:$0xff] }
  0xd8   :  { %1507 = vperm.xlu0 %3377, %v1341_v1  }
  0xda   :  { %v4266_v7 = vpop.permute.xlu1 %346 }
  0xdb   :  { %v4274_v10 = vpop.permute.xlu0 %341  ;;  %1662 = vperm.xlu1 %3378, %v1372_v4   ;;  %v1376_v4 = vld [vmem:[%s5226_s5 + $0x1e0] sm:$0xff] }
  0xdc   :  { %1427 = vperm.xlu0 %3377, %v1325_v5   ;;  %v1329_v5 = vld [vmem:[%s5226_s5 + $0x68] sm:$0xff] }
  0xdd   :  { %1028 = vmatmul.mubr.bf16.gmra.mrb[48].mxu0 %v3455_v6  ;;  %v3479_v6 = vld [vmem:[%s5223_s2 + $0x100] ss:$8 sps:$4 sm:$0xff]  }
  0xde   :  { %2149 = vmatmul.mubr.bf16.gmra.mrb[48].mxu1 %v3456_v8  ;;  %v4285_v14 = vpop.permute.xlu1 %356  ;;  %1035 = vmatprep.mubr.bf16.mxu0 %v3457_v9  ;;  %v3480_v9 = vld [vmem:[%s5225_s4 + $0x100] ss:$8 sps:$4 sm:$0xff]  }
  0xdf   :  { %v4287_v15 = vpop.permute.xlu0 %351  ;;  %1582 = vperm.xlu1 %3378, %v1356_v12   ;;  %2156 = vmatprep.mubr.bf16.mxu1 %v3459_v11  ;;  %v3481_v11 = vld [vmem:[%s5223_s2 + $0x114] ss:$8 sps:$4 sm:$0xff]  }
  0xe0   :  { %1667 = vperm.xlu0 %3377, %v1373_v13   ;;  %v3483_v13 = vld [vmem:[%s5225_s4 + $0x114] ss:$8 sps:$4 sm:$0xff]  }
  0xe2   :  { %v4298_v19 = vpop.permute.xlu1 %366 }
  0xe3   :  { %v4306_v22 = vpop.permute.xlu0 %361  ;;  %1512 = vperm.xlu1 %3378, %v1342_v16   ;;  %v1360_v16 = vld [vmem:[%s5226_s5 + $0x160] sm:$0xff] }
  0xe4   :  { %1587 = vperm.xlu0 %3377, %v1357_v17   ;;  %v1377_v17 = vld [vmem:[%s5226_s5 + $0x1e8] sm:$0xff] }
  0xe5   :  { %1036 = vmatmul.mubr.bf16.gmra.mrb[52].mxu0 %v3461_v18 }
  0xe6   :  { %2157 = vmatmul.mubr.bf16.gmra.mrb[52].mxu1 %v3462_v20  ;;  %v4317_v28 = vpop.permute.xlu1 %376  ;;  %1043 = vmatprep.mubr.bf16.mxu0 %v3463_v21  ;;  %v1346_v21 = vld [vmem:[%s5226_s5 + $0xf0] sm:$0xff] }
  0xe7   :  { %v4319_v29 = vpop.permute.xlu0 %371  ;;  %1432 = vperm.xlu1 %3378, %v1326_v24   ;;  %2164 = vmatprep.mubr.bf16.mxu1 %v3465_v23  ;;  %v1361_v23 = vld [vmem:[%s5226_s5 + $0x168] sm:$0xff]  ;;  %v3485_v24 = vld [vmem:[%s5223_s2 + $0x110] ss:$8 sps:$4 sm:$0xff]  }
  0xe8   :  { %1517 = vperm.xlu0 %3377, %v1343_v27  }
  0xea   :  { %v4330_v36 = vpop.permute.xlu1 %386 }
  0xeb   :  { %v4338_v40 = vpop.permute.xlu0 %381  ;;  %1672 = vperm.xlu1 %3378, %v1374_v31   ;;  %v3486_v31 = vld [vmem:[%s5225_s4 + $0x110] ss:$8 sps:$4 sm:$0xff]  }
  0xec   :  { %1437 = vperm.xlu0 %3377, %v1327_v33   ;;  %v3487_v33 = vld [vmem:[%s5223_s2 + $0x124] ss:$8 sps:$4 sm:$0xff]  }
  0xed   :  { %1044 = vmatmul.mubr.bf16.gmra.mrb[56].mxu0 %v3467_v34 }
  0xee   :  { %2165 = vmatmul.mubr.bf16.gmra.mrb[56].mxu1 %v3468_v37  ;;  %v4349_v46 = vpop.permute.xlu1 %396  ;;  %1051 = vmatprep.mubr.bf16.mxu0 %v3469_v39  ;;  %v3489_v37 = vld [vmem:[%s5225_s4 + $0x124] ss:$8 sps:$4 sm:$0xff]   ;;  %v1330_v39 = vld [vmem:[%s5226_s5 + $0x70] sm:$0xff] }
  0xef   :  { %v4351_v48 = vpop.permute.xlu0 %391  ;;  %1592 = vperm.xlu1 %3378, %v1358_v44   ;;  %2172 = vmatprep.mubr.bf16.mxu1 %v3471_v41  ;;  %v1347_v41 = vld [vmem:[%s5226_s5 + $0xf8] sm:$0xff] }
  0xf0   :  { %1677 = vperm.xlu0 %3377, %v1375_v45  }
  0xf2   :  { %v4362_v53 = vpop.permute.xlu1 %406 }
  0xf3   :  { %5233 = vst [vmem:[#allocation13_spill] sm:$0xff] %v4362_v53  ;;  %v4370_v58 = vpop.permute.xlu0 %401  ;;  %1522 = vperm.xlu1 %3378, %v1344_v49   ;;  %v1378_v49 = vld [vmem:[%s5226_s5 + $0x1f0] sm:$0xff] }
  0xf4   :  { %1597 = vperm.xlu0 %3377, %v1359_v51   ;;  %v1331_v51 = vld [vmem:[%s5226_s5 + $0x78] sm:$0xff] }
  0xf5   :  { %1052 = vmatmul.mubr.bf16.gmra.mrb[60].mxu0 %v3473_v52  ;;  %v3491_v52 = vld [vmem:[%s5223_s2 + $0x120] ss:$8 sps:$4 sm:$0xff]  }
  0xf6   :  { %2173 = vmatmul.mubr.bf16.gmra.mrb[60].mxu1 %v3474_v56  ;;  %v4381_v0 = vpop.permute.xlu1 %416  ;;  %1059 = vmatprep.mubr.bf16.mxu0 %v3475_v57  ;;  %v3492_v57 = vld [vmem:[%s5225_s4 + $0x120] ss:$8 sps:$4 sm:$0xff]  }
  0xf7   :  { %5234 = vst [vmem:[#allocation14_spill] sm:$0xff] %v4381_v0  ;;  %v4383_v1 = vpop.permute.xlu0 %411  ;;  %1442 = vperm.xlu1 %3378, %v1328_v61   ;;  %2180 = vmatprep.mubr.bf16.mxu1 %v3477_v60  ;;  %v3493_v60 = vld [vmem:[%s5223_s2 + $0x134] ss:$8 sps:$4 sm:$0xff]  }
  0xf8   :  { %5235 = vst [vmem:[#allocation15_spill] sm:$0xff] %v4383_v1  ;;  %1527 = vperm.xlu0 %3377, %v1345_v63   ;;  %v3495_v63 = vld [vmem:[%s5225_s4 + $0x134] ss:$8 sps:$4 sm:$0xff]  }
  0xfa   :  { %v4394_v8 = vpop.permute.xlu1 %426 }
  0xfb   :  { %5236 = vst [vmem:[#allocation16_spill] sm:$0xff] %v4394_v8  ;;  %v4402_v12 = vpop.permute.xlu0 %421  ;;  %1682 = vperm.xlu1 %3378, %v1376_v4   ;;  %v1362_v4 = vld [vmem:[%s5226_s5 + $0x170] sm:$0xff] }
  0xfc   :  { %5237 = vst [vmem:[#allocation17_spill] sm:$0xff] %v4402_v12  ;;  %1447 = vperm.xlu0 %3377, %v1329_v5   ;;  %v1379_v5 = vld [vmem:[%s5226_s5 + $0x1f8] sm:$0xff] }
  0xfd   :  { %1060 = vmatmul.mubr.bf16.gmra.mrb[64].mxu0 %v3479_v6 }
  0xfe   :  { %2181 = vmatmul.mubr.bf16.gmra.mrb[64].mxu1 %v3480_v9  ;;  %v4413_v18 = vpop.permute.xlu1 %436  ;;  %1067 = vmatprep.mubr.bf16.mxu0 %v3481_v11  ;;  %v243_v11 = vld [vmem:[%s5224_s3 + $0x180] sm:$0xff] }
  0xff   :  { %5238 = vst [vmem:[#allocation18_spill] sm:$0xff] %v4413_v18  ;;  %v4415_v20 = vpop.permute.xlu0 %431  ;;  %1602 = vperm.xlu1 %3378, %v1360_v16   ;;  %2188 = vmatprep.mubr.bf16.mxu1 %v3483_v13  ;;  %v1363_v13 = vld [vmem:[%s5226_s5 + $0x178] sm:$0xff] }
 0x100   :  { %5239 = vst [vmem:[#allocation19_spill] sm:$0xff] %v4415_v20  ;;  %1687 = vperm.xlu0 %3377, %v1377_v17   ;;  %v3497_v16 = vld [vmem:[%s5223_s2 + $0x130] ss:$8 sps:$4 sm:$0xff]   ;;  %v3547_v20 = vld [vmem:[%s5223_s2 + $0x1c4] ss:$8 sps:$4 sm:$0xff]  }
 0x102   :  { %v4426_v27 = vpop.permute.xlu1 %446 }
 0x103   :  { %5240 = vst [vmem:[#allocation20_spill] sm:$0xff] %v4426_v27  ;;  %v4434_v34 = vpop.permute.xlu0 %441  ;;  %1532 = vperm.xlu1 %3378, %v1346_v21   ;;  %v3498_v21 = vld [vmem:[%s5225_s4 + $0x130] ss:$8 sps:$4 sm:$0xff]   ;;  %v2893_v27 = vld [vmem:[%s5229_s8 + $0x20] sm:$0xff] }
 0x104   :  { %5241 = vst [vmem:[#allocation21_spill] sm:$0xff] %v4434_v34  ;;  %1607 = vperm.xlu0 %3377, %v1361_v23   ;;  %v3499_v23 = vld [vmem:[%s5223_s2 + $0x144] ss:$8 sps:$4 sm:$0xff]   ;;  %v2895_v34 = vld [vmem:[%s5229_s8 + $0x30] sm:$0xff] }
 0x105   :  { %1068 = vmatmul.mubr.bf16.gmra.mrb[68].mxu0 %v3485_v24 }
 0x106   :  { %2189 = vmatmul.mubr.bf16.gmra.mrb[68].mxu1 %v3486_v31  ;;  %v4445_v44 = vpop.permute.xlu1 %456  ;;  %1075 = vmatprep.mubr.bf16.mxu0 %v3487_v33  ;;  %v3501_v31 = vld [vmem:[%s5225_s4 + $0x144] ss:$8 sps:$4 sm:$0xff]   ;;  %v245_v33 = vld [vmem:[%s5224_s3 + $0x190] sm:$0xff] }
 0x107   :  { %5242 = vst [vmem:[#allocation22_spill] sm:$0xff] %v4445_v44  ;;  %v4447_v45 = vpop.permute.xlu0 %451  ;;  %1452 = vperm.xlu1 %3378, %v1330_v39   ;;  %2196 = vmatprep.mubr.bf16.mxu1 %v3489_v37  ;;  %v244_v37 = vld [vmem:[%s5224_s3 + $0x188] sm:$0xff] }
 0x108   :  { %5243 = vst [vmem:[#allocation23_spill] sm:$0xff] %v4447_v45  ;;  %1537 = vperm.xlu0 %3377, %v1347_v41  }
 0x10a   :  { %v4458_v56 = vpop.permute.xlu1 %466 }
 0x10b   :  { %5244 = vst [vmem:[#allocation24_spill] sm:$0xff] %v4458_v56  ;;  %v4466_v61 = vpop.permute.xlu0 %461  ;;  %1692 = vperm.xlu1 %3378, %v1378_v49   ;;  %v247_v49 = vld [vmem:[%s5224_s3 + $0x1a0] sm:$0xff] }
 0x10c   :  { %5245 = vst [vmem:[#allocation25_spill] sm:$0xff] %v4466_v61  ;;  %1457 = vperm.xlu0 %3377, %v1331_v51   ;;  %v246_v51 = vld [vmem:[%s5224_s3 + $0x198] sm:$0xff]  ;;  %v2891_v61 = vld [vmem:[%s5229_s8 + $0x10] sm:$0xff] }
 0x10d   :  { %1076 = vmatmul.mubr.bf16.gmra.mrb[72].mxu0 %v3491_v52  ;;  %v3503_v52 = vld [vmem:[%s5223_s2 + $0x140] ss:$8 sps:$4 sm:$0xff]  }
 0x10e   :  { %2197 = vmatmul.mubr.bf16.gmra.mrb[72].mxu1 %v3492_v57  ;;  %v4477_v6 = vpop.permute.xlu1 %476  ;;  %1083 = vmatprep.mubr.bf16.mxu0 %v3493_v60  ;;  %v3504_v60 = vld [vmem:[%s5225_s4 + $0x140] ss:$8 sps:$4 sm:$0xff]  }
 0x10f   :  { %5246 = vst [vmem:[#allocation26_spill] sm:$0xff] %v4477_v6  ;;  %v4479_v9 = vpop.permute.xlu0 %471  ;;  %1612 = vperm.xlu1 %3378, %v1362_v4   ;;  %2204 = vmatprep.mubr.bf16.mxu1 %v3495_v63  ;;  %v3505_v63 = vld [vmem:[%s5223_s2 + $0x154] ss:$8 sps:$4 sm:$0xff]  }
 0x110   :  { %5247 = vst [vmem:[#allocation27_spill] sm:$0xff] %v4479_v9  ;;  %1697 = vperm.xlu0 %3377, %v1379_v5   ;;  %v3507_v5 = vld [vmem:[%s5225_s4 + $0x154] ss:$8 sps:$4 sm:$0xff]  }
 0x111   :  { %v241_v6 = vld [vmem:[%s5224_s3 + $0x170] sm:$0xff] }
 0x112   :  { %v4490_v17 = vpop.permute.xlu1 %1462 }
 0x113   :  { %v4498_v24 = vpop.permute.xlu0 %481  ;;  %501 = vperm.xlu1 %3378, %v243_v11   ;;  %v249_v11 = vld [vmem:[%s5224_s3 + $0x1b0] sm:$0xff] }
 0x114   :  { %5248 = vst [vmem:[#allocation28_spill] sm:$0xff] %v4498_v24  ;;  %1617 = vperm.xlu0 %3377, %v1363_v13   ;;  %v248_v13 = vld [vmem:[%s5224_s3 + $0x1a8] sm:$0xff] }
 0x115   :  { %1084 = vmatmul.mubr.bf16.gmra.mrb[76].mxu0 %v3497_v16 }
 0x116   :  { %2205 = vmatmul.mubr.bf16.gmra.mrb[76].mxu1 %v3498_v21  ;;  %v4509_v39 = vpop.permute.xlu1 %1382  ;;  %1091 = vmatprep.mubr.bf16.mxu0 %v3499_v23  ;;  %v251_v23 = vld [vmem:[%s5224_s3 + $0x1c0] sm:$0xff] }
 0x117   :  { %v4511_v41 = vpop.permute.xlu0 %1467  ;;  %511 = vperm.xlu1 %3378, %v245_v33   ;;  %2212 = vmatprep.mubr.bf16.mxu1 %v3501_v31  ;;  %v250_v31 = vld [vmem:[%s5224_s3 + $0x1b8] sm:$0xff] }
 0x118   :  { %506 = vperm.xlu0 %3377, %v244_v37   ;;  %v3509_v33 = vld [vmem:[%s5223_s2 + $0x150] ss:$8 sps:$4 sm:$0xff]  }
 0x11a   :  { %v4522_v57 = vpop.permute.xlu1 %1622 }
 0x11b   :  { %5249 = vst [vmem:[#allocation29_spill] sm:$0xff] %v4522_v57  ;;  %v4530_v4 = vpop.permute.xlu0 %1387  ;;  %521 = vperm.xlu1 %3378, %v247_v49   ;;  %v3510_v49 = vld [vmem:[%s5225_s4 + $0x150] ss:$8 sps:$4 sm:$0xff]  }
 0x11c   :  { %516 = vperm.xlu0 %3377, %v246_v51   ;;  %v3511_v51 = vld [vmem:[%s5223_s2 + $0x164] ss:$8 sps:$4 sm:$0xff]  }
 0x11d   :  { %1092 = vmatmul.mubr.bf16.gmra.mrb[80].mxu0 %v3503_v52 }
 0x11e   :  { %2213 = vmatmul.mubr.bf16.gmra.mrb[80].mxu1 %v3504_v60  ;;  %v4541_v16 = vpop.permute.xlu1 %1542  ;;  %1099 = vmatprep.mubr.bf16.mxu0 %v3505_v63  ;;  %v3513_v60 = vld [vmem:[%s5225_s4 + $0x164] ss:$8 sps:$4 sm:$0xff]   ;;  %v253_v63 = vld [vmem:[%s5224_s3 + $0x1d0] sm:$0xff] }
 0x11f   :  { %5250 = vst [vmem:[#allocation30_spill] sm:$0xff] %v4541_v16  ;;  %v4543_v21 = vpop.permute.xlu0 %1627  ;;  %531 = vperm.xlu1 %3378, %v249_v11   ;;  %2220 = vmatprep.mubr.bf16.mxu1 %v3507_v5  ;;  %v252_v5 = vld [vmem:[%s5224_s3 + $0x1c8] sm:$0xff] }
 0x120   :  { %5251 = vst [vmem:[#allocation31_spill] sm:$0xff] %v4543_v21  ;;  %526 = vperm.xlu0 %3377, %v248_v13   ;;  %v256_v21 = vld [vmem:[%s5224_s3 + $0x1e8] sm:$0xff] }
 0x122   :  { %v4554_v37 = vpop.permute.xlu1 %1472 }
 0x123   :  { %v4562_v52 = vpop.permute.xlu0 %1547  ;;  %541 = vperm.xlu1 %3378, %v251_v23   ;;  %v255_v23 = vld [vmem:[%s5224_s3 + $0x1e0] sm:$0xff] }
 0x124   :  { %5252 = vst [vmem:[#allocation32_spill] sm:$0xff] %v4562_v52  ;;  %536 = vperm.xlu0 %3377, %v250_v31   ;;  %v254_v31 = vld [vmem:[%s5224_s3 + $0x1d8] sm:$0xff] }
 0x125   :  { %1100 = vmatmul.mubr.bf16.gmra.mrb[84].mxu0 %v3509_v33  ;;  %v3515_v33 = vld [vmem:[%s5223_s2 + $0x160] ss:$8 sps:$4 sm:$0xff]  }
 0x126   :  { %2221 = vmatmul.mubr.bf16.gmra.mrb[84].mxu1 %v3510_v49  ;;  %v4573_v11 = vpop.permute.xlu1 %1392  ;;  %1107 = vmatprep.mubr.bf16.mxu0 %v3511_v51  ;;  %v3516_v51 = vld [vmem:[%s5225_s4 + $0x160] ss:$8 sps:$4 sm:$0xff]  }
 0x127   :  { %v4575_v13 = vpop.permute.xlu0 %1477  ;;  %551 = vperm.xlu1 %3378, %v253_v63   ;;  %2228 = vmatprep.mubr.bf16.mxu1 %v3513_v60  ;;  %v3517_v60 = vld [vmem:[%s5223_s2 + $0x174] ss:$8 sps:$4 sm:$0xff]  }
 0x128   :  { %546 = vperm.xlu0 %3377, %v252_v5   ;;  %v3519_v5 = vld [vmem:[%s5225_s4 + $0x174] ss:$8 sps:$4 sm:$0xff]  }
 0x12a   :  { %v4586_v49 = vpop.permute.xlu1 %1632 }
 0x12b   :  { %5253 = vst [vmem:[#allocation33_spill] sm:$0xff] %v4586_v49  ;;  %v4594_v63 = vpop.permute.xlu0 %1397  ;;  %561 = vperm.xlu1 %3378, %v255_v23   ;;  %v240_v49 = vld [vmem:[%s5224_s3 + $0x168] sm:$0xff]  ;;  %v258_v23 = vld [vmem:[%s5224_s3 + $0x1f8] sm:$0xff] }
 0x12c   :  { %556 = vperm.xlu0 %3377, %v254_v31   ;;  %v257_v31 = vld [vmem:[%s5224_s3 + $0x1f0] sm:$0xff] }
 0x12d   :  { %1108 = vmatmul.mubr.bf16.gmra.mrb[88].mxu0 %v3515_v33  ;;  %v3521_v33 = vld [vmem:[%s5223_s2 + $0x170] ss:$8 sps:$4 sm:$0xff]  }
 0x12e   :  { %2229 = vmatmul.mubr.bf16.gmra.mrb[88].mxu1 %v3516_v51  ;;  %v4605_v57 = vpop.permute.xlu1 %1552  ;;  %1115 = vmatprep.mubr.bf16.mxu0 %v3517_v60 }
 0x12f   :  { %5254 = vst [vmem:[#allocation34_spill] sm:$0xff] %v4605_v57  ;;  %v4607_v24 = vpop.permute.xlu0 %1637  ;;  %486 = vperm.xlu1 %3378, %v240_v49   ;;  %2236 = vmatprep.mubr.bf16.mxu1 %v3519_v5  ;;  %v3522_v49 = vld [vmem:[%s5225_s4 + $0x170] ss:$8 sps:$4 sm:$0xff]   ;;  %v3525_v5 = vld [vmem:[%s5225_s4 + $0x184] ss:$8 sps:$4 sm:$0xff]  }
 0x130   :  { %5255 = vst [vmem:[#allocation35_spill] sm:$0xff] %v4607_v24  ;;  %566 = vperm.xlu0 %3377, %v256_v21   ;;  %v3523_v21 = vld [vmem:[%s5223_s2 + $0x184] ss:$8 sps:$4 sm:$0xff]   ;;  %v242_v24 = vld [vmem:[%s5224_s3 + $0x178] sm:$0xff] }
 0x132   :  { %v4618_v51 = vpop.permute.xlu1 %1482 }
 0x133   :  { %v4626_v60 = vpop.permute.xlu0 %1557  ;;  %576 = vperm.xlu1 %3378, %v258_v23   ;;  %v2890_v23 = vld [vmem:[%s5229_s8 + $0x8] sm:$0xff] }
 0x134   :  { %5256 = vst [vmem:[#allocation36_spill] sm:$0xff] %v4626_v60  ;;  %571 = vperm.xlu0 %3377, %v257_v31   ;;  %v2889_v31 = vld [vmem:[%s5229_s8] sm:$0xff] }
 0x135   :  { %1116 = vmatmul.mubr.bf16.gmra.mrb[92].mxu0 %v3521_v33  ;;  %v3527_v33 = vld [vmem:[%s5223_s2 + $0x180] ss:$8 sps:$4 sm:$0xff]  }
 0x136   :  { %2237 = vmatmul.mubr.bf16.gmra.mrb[92].mxu1 %v3522_v49  ;;  %v4637_v9 = vpop.permute.xlu1 %1402  ;;  %1123 = vmatprep.mubr.bf16.mxu0 %v3523_v21 }
 0x137   :  { %v4639_v56 = vpop.permute.xlu0 %1487  ;;  %496 = vperm.xlu1 %3378, %v242_v24   ;;  %2244 = vmatprep.mubr.bf16.mxu1 %v3525_v5  ;;  %v3528_v24 = vld [vmem:[%s5225_s4 + $0x180] ss:$8 sps:$4 sm:$0xff]   ;;  %v3531_v5 = vld [vmem:[%s5225_s4 + $0x194] ss:$8 sps:$4 sm:$0xff]  }
 0x138   :  { %491 = vperm.xlu0 %3377, %v241_v6   ;;  %v3529_v6 = vld [vmem:[%s5223_s2 + $0x194] ss:$8 sps:$4 sm:$0xff]  }
 0x13a   :  { %v4650_v49 = vpop.permute.xlu1 %1642 }
 0x13b   :  { %5257 = vst [vmem:[#allocation37_spill] sm:$0xff] %v4650_v49  ;;  %v4658_v21 = vpop.permute.xlu0 %1407  ;;  %2904 = vperm.xlu1 %3378, %v2890_v23   ;;  %v2892_v49 = vld [vmem:[%s5229_s8 + $0x18] sm:$0xff]  ;;  %v2954_v23 = vld [vmem:[%s5230_s9 + $0x8] sm:$0xff] }
 0x13c   :  { %2899 = vperm.xlu0 %3377, %v2889_v31   ;;  %v2953_v31 = vld [vmem:[%s5230_s9] sm:$0xff] }
 0x13d   :  { %1124 = vmatmul.mubr.bf16.gmra.mrb[96].mxu0 %v3527_v33  ;;  %v3533_v33 = vld [vmem:[%s5223_s2 + $0x190] ss:$8 sps:$4 sm:$0xff]  }
 0x13e   :  { %2245 = vmatmul.mubr.bf16.gmra.mrb[96].mxu1 %v3528_v24  ;;  %v4669_v44 = vpop.permute.xlu1 %1562  ;;  %1131 = vmatprep.mubr.bf16.mxu0 %v3529_v6 }
 0x13f   :  { %5258 = vst [vmem:[#allocation38_spill] sm:$0xff] %v4669_v44  ;;  %v4671_v45 = vpop.permute.xlu0 %1647  ;;  %2914 = vperm.xlu1 %3378, %v2892_v49   ;;  %2252 = vmatprep.mubr.bf16.mxu1 %v3531_v5  ;;  %v3534_v49 = vld [vmem:[%s5225_s4 + $0x190] ss:$8 sps:$4 sm:$0xff]   ;;  %v3537_v5 = vld [vmem:[%s5225_s4 + $0x1a4] ss:$8 sps:$4 sm:$0xff]  }
 0x140   :  { %5259 = vst [vmem:[#allocation39_spill] sm:$0xff] %v4671_v45  ;;  %2909 = vperm.xlu0 %3377, %v2891_v61   ;;  %v3535_v61 = vld [vmem:[%s5223_s2 + $0x1a4] ss:$8 sps:$4 sm:$0xff]   ;;  %v2955_v45 = vld [vmem:[%s5230_s9 + $0x10] sm:$0xff] }
 0x142   :  { %v4682_v24 = vpop.permute.xlu1 %1492 }
 0x143   :  { %v4690_v6 = vpop.permute.xlu0 %1567  ;;  %2968 = vperm.xlu1 %3378, %v2954_v23   ;;  %v2956_v23 = vld [vmem:[%s5230_s9 + $0x18] sm:$0xff] }
 0x144   :  { %5260 = vst [vmem:[#allocation40_spill] sm:$0xff] %v4690_v6  ;;  %2963 = vperm.xlu0 %3377, %v2953_v31   ;;  %v2894_v31 = vld [vmem:[%s5229_s8 + $0x28] sm:$0xff] }
 0x145   :  { %1132 = vmatmul.mubr.bf16.gmra.mrb[100].mxu0 %v3533_v33  ;;  %v3539_v33 = vld [vmem:[%s5223_s2 + $0x1a0] ss:$8 sps:$4 sm:$0xff]  }
 0x146   :  { %2253 = vmatmul.mubr.bf16.gmra.mrb[100].mxu1 %v3534_v49  ;;  %v4701_v44 = vpop.permute.xlu1 %1412  ;;  %1139 = vmatprep.mubr.bf16.mxu0 %v3535_v61 }
 0x147   :  { %v4703_v6 = vpop.permute.xlu0 %1497  ;;  %2973 = vperm.xlu1 %3378, %v2955_v45   ;;  %2260 = vmatprep.mubr.bf16.mxu1 %v3537_v5  ;;  %v3540_v45 = vld [vmem:[%s5225_s4 + $0x1a0] ss:$8 sps:$4 sm:$0xff]   ;;  %v3543_v5 = vld [vmem:[%s5225_s4 + $0x1b4] ss:$8 sps:$4 sm:$0xff]  }
 0x148   :  { %2919 = vperm.xlu0 %3377, %v2893_v27   ;;  %v3541_v27 = vld [vmem:[%s5223_s2 + $0x1b4] ss:$8 sps:$4 sm:$0xff]  }
 0x14a   :  { %v4714_v49 = vpop.permute.xlu1 %1652 }
 0x14b   :  { %5261 = vst [vmem:[#allocation41_spill] sm:$0xff] %v4714_v49  ;;  %v4722_v61 = vpop.permute.xlu0 %1417  ;;  %2978 = vperm.xlu1 %3378, %v2956_v23   ;;  %v2957_v49 = vld [vmem:[%s5230_s9 + $0x20] sm:$0xff]  ;;  %v2958_v23 = vld [vmem:[%s5230_s9 + $0x28] sm:$0xff] }
 0x14c   :  { %2924 = vperm.xlu0 %3377, %v2894_v31  }
 0x14d   :  { %1140 = vmatmul.mubr.bf16.gmra.mrb[104].mxu0 %v3539_v33  ;;  %v2896_v33 = vld [vmem:[%s5229_s8 + $0x38] sm:$0xff] }
 0x14e   :  { %2261 = vmatmul.mubr.bf16.gmra.mrb[104].mxu1 %v3540_v45  ;;  %v4733_v60 = vpop.permute.xlu1 %1572  ;;  %1147 = vmatprep.mubr.bf16.mxu0 %v3541_v27  ;;  %v3545_v45 = vld [vmem:[%s5223_s2 + $0x1b0] ss:$8 sps:$4 sm:$0xff]  }
 0x14f   :  { %5262 = vst [vmem:[#allocation42_spill] sm:$0xff] %v4733_v60  ;;  %v4735_v18 = vpop.permute.xlu0 %1657  ;;  %2983 = vperm.xlu1 %3378, %v2957_v49   ;;  %2268 = vmatprep.mubr.bf16.mxu1 %v3543_v5  ;;  %v3546_v60 = vld [vmem:[%s5225_s4 + $0x1b0] ss:$8 sps:$4 sm:$0xff]  }
 0x150   :  { %5263 = vst [vmem:[#allocation43_spill] sm:$0xff] %v4735_v18  ;;  %2929 = vperm.xlu0 %3377, %v2895_v34   ;;  %v933_v31 = vpop.f32.mrb[0].mxu0 }
 0x151   :  { %v2054_v57 = vpop.f32.mrb[0].mxu1  ;;  %v934_v27 = vadd.f32 %v933_v31, %v4146_v26  ;;  %v935_v18 = vpop.f32.mrb[1].mxu0  ;;  %v3549_v26 = vld [vmem:[%s5225_s4 + $0x1c4] ss:$8 sps:$4 sm:$0xff]  }
 0x152   :  { %v2055_v49 = vadd.f32 %v2054_v57, %v4509_v39  ;;  %v2056_v34 = vpop.f32.mrb[1].mxu1  ;;  %v4748_v5 = vpop.permute.xlu1 %1502  ;;  %v2960_v57 = vld [vmem:[%s5230_s9 + $0x38] sm:$0xff] }
 0x153   :  { %v4756_v52 = vpop.permute.xlu0 %1577  ;;  %v2057_v8 = vpop.f32.mrb[2].mxu1  ;;  %2988 = vperm.xlu1 %3378, %v2958_v23   ;;  %v2959_v34 = vld [vmem:[%s5230_s9 + $0x30] sm:$0xff] }
 0x154   :  { %5264 = vst [vmem:[#allocation44_spill] sm:$0xff] %v4756_v52  ;;  %v2058_v18 = vadd.f32 %v2057_v8, %v4530_v4  ;;  %2934 = vperm.xlu0 %3377, %v2896_v33   ;;  %v2059_v39 = vpop.f32.mrb[3].mxu1  ;;  %v936_v31 = vpop.f32.mrb[2].mxu0  ;;  %v1188_v52 = vmax.f32 %v934_v27, 0.0  ;;  %v2309_v12 = vmax.f32 %v2055_v49, 0.0 }
 0x155   :  { %1148 = vmatmul.mubr.bf16.gmra.mrb[108].mxu0 %v3545_v45  ;;  %v937_v23 = vadd.f32 %v936_v31, %v4162_v32  ;;  %v938_v16 = vpop.f32.mrb[3].mxu0  ;;  %v3022_v27 = vld [vmem:[#allocation2] sm:$0x1] }
 0x156   :  { %v2310_v0 = vmax.f32 %v2058_v18, 0.0  ;;  %2269 = vmatmul.mubr.bf16.gmra.mrb[108].mxu1 %v3546_v60  ;;  %v4769_v8 = vpop.permute.xlu1 %1422  ;;  %1155 = vmatprep.mubr.bf16.mxu0 %v3547_v20  ;;  %v3551_v32 = vld [vmem:[%s5223_s2 + $0x1c0] ss:$8 sps:$4 sm:$0xff]  }
 0x157   :  { %v4771_v4 = vpop.permute.xlu0 %1507  ;;  %2998 = vperm.xlu1 %3378, %v2960_v57   ;;  %2276 = vmatprep.mubr.bf16.mxu1 %v3549_v26  ;;  %v1189_v33 = vmax.f32 %v937_v23, 0.0 }
 0x158   :  { %v4773_v45 = vpack.c.bf16 %v2310_v0, %v2309_v12  ;;  %2993 = vperm.xlu0 %3377, %v2959_v34   ;;  %v941_v39 = vpop.f32.mrb[4].mxu0  ;;  %v3552_v0 = vld [vmem:[%s5225_s4 + $0x1c0] ss:$8 sps:$4 sm:$0xff]   ;;  %v3553_v12 = vld [vmem:[%s5223_s2 + $0x1d4] ss:$8 sps:$4 sm:$0xff]  }
 0x159   :  { %v2062_v1 = vpop.f32.mrb[4].mxu1  ;;  %v4778_v16 = vpack.c.bf16 %v1189_v33, %v1188_v52  ;;  %v942_v60 = vadd.f32 %v941_v39, %v4144_v25  ;;  %v943_v20 = vpop.f32.mrb[5].mxu0  ;;  %v3555_v25 = vld [vmem:[%s5225_s4 + $0x1d4] ss:$8 sps:$4 sm:$0xff]  }
 0x15a   :  { %v2063_v49 = vadd.f32 %v2062_v1, %v4573_v11  ;;  %v2064_v18 = vpop.f32.mrb[5].mxu1  ;;  %v4782_v26 = vpop.permute.xlu1 %1662 }
 0x15b   :  { %5265 = vst [vmem:[#allocation45_spill] sm:$0xff] %v4778_v16  ;;  %5266 = vst [vmem:[#allocation46_spill] sm:$0xff] %v4782_v26  ;;  %v4790_v57 = vpop.permute.xlu0 %1427  ;;  %v2065_v52 = vpop.f32.mrb[6].mxu1  ;;  %v1190_v34 = vmax.f32 %v942_v60, 0.0 }
 0x15c   :  { %v2066_v1 = vadd.f32 %v2065_v52, %v4594_v63  ;;  %3025 = vperm.xlu0 %3377, %v3022_v27   ;;  %v2067_v11 = vpop.f32.mrb[7].mxu1  ;;  %v944_v31 = vpop.f32.mrb[6].mxu0  ;;  %v2311_v39 = vmax.f32 %v2063_v49, 0.0 }
 0x15d   :  { %1156 = vmatmul.mubr.bf16.gmra.mrb[112].mxu0 %v3551_v32  ;;  %v945_v23 = vadd.f32 %v944_v31, %v4157_v30  ;;  %v946_v33 = vpop.f32.mrb[7].mxu0  ;;  %v3557_v32 = vld [vmem:[%s5223_s2 + $0x1d0] ss:$8 sps:$4 sm:$0xff]  }
 0x15e   :  { %v2312_v20 = vmax.f32 %v2066_v1, 0.0  ;;  %2277 = vmatmul.mubr.bf16.gmra.mrb[112].mxu1 %v3552_v0  ;;  %v4797_v18 = vpop.permute.xlu1 %1582  ;;  %1163 = vmatprep.mubr.bf16.mxu0 %v3553_v12  ;;  %v3559_v1 = vld [vmem:[%s5223_s2 + $0x1e4] ss:$8 sps:$4 sm:$0xff]  }
 0x15f   :  { %5267 = vst [vmem:[#allocation47_spill] sm:$0xff] %v4797_v18  ;;  %v4799_v26 = vpop.permute.xlu0 %1667  ;;  %2284 = vmatprep.mubr.bf16.mxu1 %v3555_v25  ;;  %v1191_v16 = vmax.f32 %v945_v23, 0.0  ;;  %v3558_v25 = vld [vmem:[%s5225_s4 + $0x1d0] ss:$8 sps:$4 sm:$0xff]  }
 0x160   :  { %5268 = vst [vmem:[#allocation48_spill] sm:$0xff] %v4799_v26  ;;  %v4801_v53 = vpack.c.bf16 %v2312_v20, %v2311_v39  ;;  %v949_v63 = vpop.f32.mrb[8].mxu0 }
 0x161   :  { %v2070_v27 = vpop.f32.mrb[8].mxu1  ;;  %v4806_v30 = vpack.c.bf16 %v1191_v16, %v1190_v34  ;;  %v950_v60 = vadd.f32 %v949_v63, %v4178_v38  ;;  %v951_v49 = vpop.f32.mrb[9].mxu0  ;;  %v3561_v38 = vld [vmem:[%s5225_s4 + $0x1e4] ss:$8 sps:$4 sm:$0xff]  }
 0x162   :  { %v2071_v0 = vadd.f32 %v2070_v27, %v4637_v9  ;;  %v2072_v12 = vpop.f32.mrb[9].mxu1  ;;  %v4810_v52 = vpop.permute.xlu1 %1512 }
 0x163   :  { %v4818_v11 = vpop.permute.xlu0 %1587  ;;  %v2073_v16 = vpop.f32.mrb[10].mxu1  ;;  %v1192_v23 = vmax.f32 %v950_v60, 0.0 }
 0x164   :  { %5269 = vst [vmem:[#allocation49_spill] sm:$0xff] %v4818_v11  ;;  %v2074_v9 = vadd.f32 %v2073_v16, %v4658_v21  ;;  %v2075_v31 = vpop.f32.mrb[11].mxu1  ;;  %v952_v34 = vpop.f32.mrb[10].mxu0  ;;  %v2313_v20 = vmax.f32 %v2071_v0, 0.0 }
 0x165   :  { %1164 = vmatmul.mubr.bf16.gmra.mrb[116].mxu0 %v3557_v32  ;;  %v953_v33 = vadd.f32 %v952_v34, %v4170_v35  ;;  %v954_v39 = vpop.f32.mrb[11].mxu0  ;;  %v3563_v32 = vld [vmem:[%s5223_s2 + $0x1e0] ss:$8 sps:$4 sm:$0xff]   ;;  %v3565_v31 = vld [vmem:[%s5223_s2 + $0x1f4] ss:$8 sps:$4 sm:$0xff]  }
 0x166   :  { %v2314_v63 = vmax.f32 %v2074_v9, 0.0  ;;  %2285 = vmatmul.mubr.bf16.gmra.mrb[116].mxu1 %v3558_v25  ;;  %v4825_v27 = vpop.permute.xlu1 %1432  ;;  %1171 = vmatprep.mubr.bf16.mxu0 %v3559_v1 }
 0x167   :  { %v4827_v49 = vpop.permute.xlu0 %1517  ;;  %2292 = vmatprep.mubr.bf16.mxu1 %v3561_v38  ;;  %v1193_v12 = vmax.f32 %v953_v33, 0.0  ;;  %v3564_v38 = vld [vmem:[%s5225_s4 + $0x1e0] ss:$8 sps:$4 sm:$0xff]  }
 0x168   :  { %v4829_v26 = vpack.c.bf16 %v2314_v63, %v2313_v20  ;;  %v957_v21 = vpop.f32.mrb[12].mxu0 }
 0x169   :  { %v2078_v16 = vpop.f32.mrb[12].mxu1  ;;  %v4834_v35 = vpack.c.bf16 %v1193_v12, %v1192_v23  ;;  %v958_v60 = vadd.f32 %v957_v21, %v4191_v43  ;;  %v959_v0 = vpop.f32.mrb[13].mxu0  ;;  %v3567_v43 = vld [vmem:[%s5225_s4 + $0x1f4] ss:$8 sps:$4 sm:$0xff]  }
 0x16a   :  { %v2079_v25 = vadd.f32 %v2078_v16, %v4701_v44  ;;  %v2080_v1 = vpop.f32.mrb[13].mxu1  ;;  %v4838_v9 = vpop.permute.xlu1 %1672 }
 0x16b   :  { %5270 = vst [vmem:[#allocation50_spill] sm:$0xff] %v4838_v9  ;;  %v1438_v34 = vpop.permute.xlu0 %1437  ;;  %v2081_v33 = vpop.f32.mrb[14].mxu1  ;;  %v1194_v20 = vmax.f32 %v958_v60, 0.0 }
 0x16c   :  { %v2082_v23 = vadd.f32 %v2081_v33, %v4722_v61  ;;  %v2083_v44 = vpop.f32.mrb[15].mxu1  ;;  %v960_v39 = vpop.f32.mrb[14].mxu0  ;;  %v2315_v21 = vmax.f32 %v2079_v25, 0.0 }
 0x16d   :  { %1172 = vmatmul.mubr.bf16.gmra.mrb[120].mxu0 %v3563_v32  ;;  %v961_v63 = vadd.f32 %v960_v39, %v4189_v42  ;;  %v962_v12 = vpop.f32.mrb[15].mxu0  ;;  %v3569_v32 = vld [vmem:[%s5223_s2 + $0x1f0] ss:$8 sps:$4 sm:$0xff]  }
 0x16e   :  { %v2316_v16 = vmax.f32 %v2082_v23, 0.0  ;;  %2293 = vmatmul.mubr.bf16.gmra.mrb[120].mxu1 %v3564_v38  ;;  %v4851_v0 = vpop.permute.xlu1 %1592  ;;  %1179 = vmatprep.mubr.bf16.mxu0 %v3565_v31  ;;  %v3570_v31 = vld [vmem:[%s5225_s4 + $0x1f0] ss:$8 sps:$4 sm:$0xff]  }
 0x16f   :  { %5271 = vst [vmem:[#allocation51_spill] sm:$0xff] %v4851_v0  ;;  %v4853_v1 = vpop.permute.xlu0 %1677  ;;  %2300 = vmatprep.mubr.bf16.mxu1 %v3567_v43  ;;  %v1195_v9 = vmax.f32 %v961_v63, 0.0  ;;  %v3573_v43 = vld [vmem:[#allocation8 + $0x4] ss:$16 sps:$4 sm:$0xff]  }
 0x170   :  { %5272 = vst [vmem:[#allocation52_spill] sm:$0xff] %v4853_v1  ;;  %v4855_v11 = vpack.c.bf16 %v2316_v16, %v2315_v21  ;;  %v965_v61 = vpop.f32.mrb[16].mxu0 }
 0x171   :  { %v2086_v33 = vpop.f32.mrb[16].mxu1  ;;  %v4860_v42 = vpack.c.bf16 %v1195_v9, %v1194_v20  ;;  %v967_v60 = vpop.f32.mrb[17].mxu0  ;;  %v966_v63 = vadd.f32 %v965_v61, %v4210_v50 }
 0x172   :  { %v2087_v25 = vadd.f32 %v2086_v33, %v4769_v8  ;;  %v2088_v38 = vpop.f32.mrb[17].mxu1  ;;  %v4863_v23 = vpop.permute.xlu1 %1522 }
 0x173   :  { %v4868_v44 = vpop.permute.xlu0 %1597  ;;  %v2089_v39 = vpop.f32.mrb[18].mxu1  ;;  %v1196_v1 = vmax.f32 %v966_v63, 0.0 }
 0x174   :  { %5273 = vst [vmem:[#allocation53_spill] sm:$0xff] %v4868_v44  ;;  %v2090_v12 = vadd.f32 %v2089_v39, %v4790_v57  ;;  %v2091_v9 = vpop.f32.mrb[19].mxu1  ;;  %v968_v20 = vpop.f32.mrb[18].mxu0  ;;  %v2317_v16 = vmax.f32 %v2087_v25, 0.0 }
 0x175   :  { %1180 = vmatmul.mubr.bf16.gmra.mrb[124].mxu0 %v3569_v32  ;;  %v969_v8 = vadd.f32 %v968_v20, %v4202_v47  ;;  %v970_v21 = vpop.f32.mrb[19].mxu0 }
 0x176   :  { %v2318_v33 = vmax.f32 %v2090_v12, 0.0  ;;  %2301 = vmatmul.mubr.bf16.gmra.mrb[124].mxu1 %v3570_v31  ;;  %v1443_v60 = vpop.permute.xlu1 %1442  ;;  %2581 = vmatprep.mubr.bf16.mxu0 %v3573_v43 }
 0x177   :  { %v4873_v38 = vpop.permute.xlu0 %1527  ;;  %v1197_v44 = vmax.f32 %v969_v8, 0.0 }
 0x178   :  { %v4875_v0 = vpack.c.bf16 %v2318_v33, %v2317_v16  ;;  %v973_v50 = vpop.f32.mrb[20].mxu0 }
 0x179   :  { %v2094_v61 = vpop.f32.mrb[20].mxu1  ;;  %v4877_v57 = vpack.c.bf16 %v1197_v44, %v1196_v1  ;;  %v975_v39 = vpop.f32.mrb[21].mxu0  ;;  %v974_v43 = vadd.f32 %v973_v50, %v4223_v55 }
 0x17a   :  { %v2095_v32 = vadd.f32 %v2094_v61, %v4825_v27  ;;  %v2096_v47 = vpop.f32.mrb[21].mxu1  ;;  %v4880_v9 = vpop.permute.xlu1 %1682 }
 0x17b   :  { %5274 = vst [vmem:[#allocation54_spill] sm:$0xff] %v4880_v9  ;;  %v1448_v25 = vpop.permute.xlu0 %1447  ;;  %v2097_v31 = vpop.f32.mrb[22].mxu1  ;;  %v1198_v27 = vmax.f32 %v974_v43, 0.0 }
 0x17c   :  { %v2098_v12 = vadd.f32 %v2097_v31, %v1438_v34  ;;  %v2099_v20 = vpop.f32.mrb[23].mxu1  ;;  %v976_v63 = vpop.f32.mrb[22].mxu0  ;;  %v2319_v16 = vmax.f32 %v2095_v32, 0.0 }
 0x17d   :  { %v977_v8 = vadd.f32 %v976_v63, %v4221_v54  ;;  %v978_v21 = vpop.f32.mrb[23].mxu0 }
 0x17e   :  { %v2320_v33 = vmax.f32 %v2098_v12, 0.0  ;;  %v4884_v1 = vpop.permute.xlu1 %1602 }
 0x17f   :  { %5275 = vst [vmem:[#allocation55_spill] sm:$0xff] %v4884_v1  ;;  %v4886_v44 = vpop.permute.xlu0 %1687  ;;  %v1199_v61 = vmax.f32 %v977_v8, 0.0 }
 0x180   :  { %5276 = vst [vmem:[#allocation56_spill] sm:$0xff] %v4886_v44  ;;  %v4888_v39 = vpack.c.bf16 %v2320_v33, %v2319_v16  ;;  %v981_v47 = vpop.f32.mrb[24].mxu0 }
 0x181   :  { %v2102_v9 = vpop.f32.mrb[24].mxu1  ;;  %v4890_v18 = vpack.c.bf16 %v1199_v61, %v1198_v27  ;;  %v983_v55 = vpop.f32.mrb[25].mxu0  ;;  %v982_v12 = vadd.f32 %v981_v47, %v4242_v62 }
 0x182   :  { %v2103_v34 = vadd.f32 %v2102_v9, %v1443_v60  ;;  %v2104_v50 = vpop.f32.mrb[25].mxu1  ;;  %v4892_v31 = vpop.permute.xlu1 %1532 }
 0x183   :  { %5277 = vst [vmem:[#allocation57_spill] sm:$0xff] %v4890_v18  ;;  %v4894_v54 = vpop.permute.xlu0 %1607  ;;  %v2105_v32 = vpop.f32.mrb[26].mxu1  ;;  %v1200_v61 = vmax.f32 %v982_v12, 0.0 }
 0x184   :  { %5278 = vst [vmem:[#allocation58_spill] sm:$0xff] %v4894_v54  ;;  %v2106_v20 = vadd.f32 %v2105_v32, %v1448_v25  ;;  %v2107_v63 = vpop.f32.mrb[27].mxu1  ;;  %v984_v43 = vpop.f32.mrb[26].mxu0  ;;  %v2321_v16 = vmax.f32 %v2103_v34, 0.0 }
 0x185   :  { %v985_v8 = vadd.f32 %v984_v43, %v4234_v59  ;;  %v986_v21 = vpop.f32.mrb[27].mxu0 }
 0x186   :  { %v2322_v33 = vmax.f32 %v2106_v20, 0.0  ;;  %v1453_v55 = vpop.permute.xlu1 %1452 }
 0x187   :  { %v4898_v27 = vpop.permute.xlu0 %1537  ;;  %v1201_v60 = vmax.f32 %v985_v8, 0.0 }
 0x188   :  { %v4900_v9 = vpack.c.bf16 %v2322_v33, %v2321_v16  ;;  %v989_v50 = vpop.f32.mrb[28].mxu0 }
 0x189   :  { %v2110_v44 = vpop.f32.mrb[28].mxu1  ;;  %v4902_v54 = vpack.c.bf16 %v1201_v60, %v1200_v61  ;;  %v991_v62 = vpop.f32.mrb[29].mxu0  ;;  %v990_v59 = vadd.f32 %v989_v50, %v4255_v3 }
 0x18a   :  { %v2111_v25 = vadd.f32 %v2110_v44, %v1453_v55  ;;  %v2112_v47 = vpop.f32.mrb[29].mxu1  ;;  %v992_v43 = vpop.f32.mrb[30].mxu0 }
 0x18b   :  { %v1458_v32 = vpop.permute.xlu0 %1457  ;;  %v2113_v63 = vpop.f32.mrb[30].mxu1  ;;  %v993_v12 = vadd.f32 %v992_v43, %v4253_v2  ;;  %v1202_v33 = vmax.f32 %v990_v59, 0.0 }
 0x18c   :  { %v2114_v34 = vadd.f32 %v2113_v63, %v1458_v32  ;;  %v2115_v20 = vpop.f32.mrb[31].mxu1  ;;  %v994_v8 = vpop.f32.mrb[31].mxu0  ;;  %v2323_v21 = vmax.f32 %v2111_v25, 0.0 }
 0x18d   :  { %v1203_v1 = vmax.f32 %v993_v12, 0.0 }
 0x18e   :  { %v2324_v16 = vmax.f32 %v2114_v34, 0.0 }
 0x18f   :  { %v4908_v44 = vpack.c.bf16 %v1203_v1, %v1202_v33 }
 0x190   :  { %v4906_v18 = vpack.c.bf16 %v2324_v16, %v2323_v21  ;;  %v997_v61 = vpop.f32.mrb[32].mxu0 }
 0x191   :  { %v2118_v60 = vpop.f32.mrb[32].mxu1  ;;  %v999_v55 = vpop.f32.mrb[33].mxu0  ;;  %v998_v47 = vadd.f32 %v997_v61, %v4274_v10 }
 0x192   :  { %v2119_v62 = vadd.f32 %v2118_v60, %v4490_v17  ;;  %v2120_v3 = vpop.f32.mrb[33].mxu1  ;;  %v1000_v25 = vpop.f32.mrb[34].mxu0 }
 0x193   :  { %v2121_v50 = vpop.f32.mrb[34].mxu1  ;;  %v1001_v63 = vadd.f32 %v1000_v25, %v4266_v7  ;;  %v1002_v59 = vpop.f32.mrb[35].mxu0  ;;  %v1204_v43 = vmax.f32 %v998_v47, 0.0 }
 0x194   :  { %v2122_v2 = vadd.f32 %v2121_v50, %v4511_v41  ;;  %v2123_v32 = vpop.f32.mrb[35].mxu1  ;;  %v2325_v34 = vmax.f32 %v2119_v62, 0.0 }
 0x195   :  { %v1205_v12 = vmax.f32 %v1001_v63, 0.0 }
 0x196   :  { %v2326_v20 = vmax.f32 %v2122_v2, 0.0 }
 0x197   :  { %v4914_v16 = vpack.c.bf16 %v1205_v12, %v1204_v43 }
 0x198   :  { %v2445_v1 = vpack.c.bf16 %v2326_v20, %v2325_v34  ;;  %v1005_v8 = vpop.f32.mrb[36].mxu0 }
 0x199   :  { %v2126_v21 = vpop.f32.mrb[36].mxu1  ;;  %v1007_v17 = vpop.f32.mrb[37].mxu0  ;;  %v1006_v7 = vadd.f32 %v1005_v8, %v4287_v15 }
 0x19a   :  { %v2127_v33 = vadd.f32 %v2126_v21, %v4554_v37  ;;  %v2128_v10 = vpop.f32.mrb[37].mxu1  ;;  %3210 = vmatprep.subr.bf16.mxu0 %v2445_v1  ;;  %v1008_v55 = vpop.f32.mrb[38].mxu0 }
 0x19b   :  { %v2129_v41 = vpop.f32.mrb[38].mxu1  ;;  %3211 = vmatpush3.bf16.msra.mxu0 %v4773_v45  ;;  %v1009_v62 = vadd.f32 %v1008_v55, %v4285_v14  ;;  %v1010_v3 = vpop.f32.mrb[39].mxu0  ;;  %v1206_v2 = vmax.f32 %v1006_v7, 0.0 }
 0x19c   :  { %v2130_v61 = vadd.f32 %v2129_v41, %v4575_v13  ;;  %v2131_v60 = vpop.f32.mrb[39].mxu1  ;;  %v2327_v50 = vmax.f32 %v2127_v33, 0.0 }
 0x19d   :  { %v1207_v32 = vmax.f32 %v1009_v62, 0.0 }
 0x19e   :  { %v2328_v47 = vmax.f32 %v2130_v61, 0.0 }
 0x19f   :  { %v4921_v59 = vpack.c.bf16 %v1207_v32, %v1206_v2 }
 0x1a0   :  { %v2446_v25 = vpack.c.bf16 %v2328_v47, %v2327_v50  ;;  %v1013_v37 = vpop.f32.mrb[40].mxu0 }
 0x1a1   :  { %v2134_v63 = vpop.f32.mrb[40].mxu1  ;;  %v1015_v34 = vpop.f32.mrb[41].mxu0  ;;  %v1014_v14 = vadd.f32 %v1013_v37, %v4306_v22 }
 0x1a2   :  { %v2135_v45 = vadd.f32 %v2134_v63, %v4618_v51  ;;  %v2136_v15 = vpop.f32.mrb[41].mxu1  ;;  %3212 = vmatprep.subr.bf16.mxu0 %v2446_v25  ;;  %v1016_v12 = vpop.f32.mrb[42].mxu0 }
 0x1a3   :  { %v2137_v13 = vpop.f32.mrb[42].mxu1  ;;  %3213 = vmatpush3.bf16.msra.mxu0 %v4801_v53  ;;  %v1017_v1 = vadd.f32 %v1016_v12, %v4298_v19  ;;  %v1018_v8 = vpop.f32.mrb[43].mxu0  ;;  %v1208_v33 = vmax.f32 %v1014_v14, 0.0 }
 0x1a4   :  { %v2138_v20 = vadd.f32 %v2137_v13, %v4639_v56  ;;  %v2139_v43 = vpop.f32.mrb[43].mxu1  ;;  %v2329_v21 = vmax.f32 %v2135_v45, 0.0 }
 0x1a5   :  { %v1209_v10 = vmax.f32 %v1017_v1, 0.0 }
 0x1a6   :  { %v2330_v17 = vmax.f32 %v2138_v20, 0.0 }
 0x1a7   :  { %v4928_v7 = vpack.c.bf16 %v1209_v10, %v1208_v33 }
 0x1a8   :  { %v2447_v41 = vpack.c.bf16 %v2330_v17, %v2329_v21  ;;  %v1021_v51 = vpop.f32.mrb[44].mxu0  ;;  %v4942_v21 = vpop.permute.xlu1 %1692 }
 0x1a9   :  { %v2142_v61 = vpop.f32.mrb[44].mxu1  ;;  %v1023_v60 = vpop.f32.mrb[45].mxu0  ;;  %v1022_v56 = vadd.f32 %v1021_v51, %v4319_v29 }
 0x1aa   :  { %v2143_v53 = vadd.f32 %v2142_v61, %v4682_v24  ;;  %v2144_v22 = vpop.f32.mrb[45].mxu1  ;;  %3214 = vmatprep.subr.bf16.mxu0 %v2447_v41  ;;  %v1024_v62 = vpop.f32.mrb[46].mxu0 }
 0x1ab   :  { %v2145_v55 = vpop.f32.mrb[46].mxu1  ;;  %3215 = vmatpush3.bf16.msra.mxu0 %v4829_v26  ;;  %v1025_v50 = vadd.f32 %v1024_v62, %v4317_v28  ;;  %v1026_v47 = vpop.f32.mrb[47].mxu0  ;;  %v1210_v25 = vmax.f32 %v1022_v56, 0.0 }
 0x1ac   :  { %v2146_v19 = vadd.f32 %v2145_v55, %v4703_v6  ;;  %v2147_v3 = vpop.f32.mrb[47].mxu1  ;;  %v2331_v2 = vmax.f32 %v2143_v53, 0.0  ;;  %v4950_v56 = vpop.permute.xlu1 %1612 }
 0x1ad   :  { %v1211_v37 = vmax.f32 %v1025_v50, 0.0  ;;  %v4953_v50 = vpop.permute.xlu0 %1697 }
 0x1ae   :  { %v2332_v32 = vmax.f32 %v2146_v19, 0.0 }
 0x1af   :  { %v4935_v34 = vpack.c.bf16 %v1211_v37, %v1210_v25 }
 0x1b0   :  { %v2448_v63 = vpack.c.bf16 %v2332_v32, %v2331_v2  ;;  %v1029_v24 = vpop.f32.mrb[48].mxu0 }
 0x1b1   :  { %v2150_v45 = vpop.f32.mrb[48].mxu1  ;;  %v1031_v29 = vpop.f32.mrb[49].mxu0  ;;  %v1030_v15 = vadd.f32 %v1029_v24, %v4338_v40 }
 0x1b2   :  { %v2152_v26 = vpop.f32.mrb[49].mxu1  ;;  %3216 = vmatprep.subr.bf16.mxu0 %v2448_v63  ;;  %v2151_v6 = vadd.f32 %v2150_v45, %v4748_v5  ;;  %v1032_v13 = vpop.f32.mrb[50].mxu0  ;;  %v5279_v45 = vld [vmem:[#allocation13_spill] sm:$0xff] }
 0x1b3   :  { %3217 = vmatpush3.bf16.msra.mxu0 %v4855_v11  ;;  %v1033_v28 = vadd.f32 %v1032_v13, %v4330_v36  ;;  %v2153_v14 = vpop.f32.mrb[50].mxu1  ;;  %v1034_v20 = vpop.f32.mrb[51].mxu0  ;;  %v1212_v1 = vmax.f32 %v1030_v15, 0.0 }
 0x1b4   :  { %v2154_v43 = vadd.f32 %v2153_v14, %v4771_v4  ;;  %v2155_v12 = vpop.f32.mrb[51].mxu1  ;;  %v2333_v17 = vmax.f32 %v2151_v6, 0.0  ;;  %v4958_v63 = vpop.permute.xlu1 %501 }
 0x1b5   :  { %v1213_v8 = vmax.f32 %v1033_v28, 0.0  ;;  %v4963_v6 = vpop.permute.xlu0 %1617 }
 0x1b6   :  { %v2334_v40 = vmax.f32 %v2154_v43, 0.0 }
 0x1b7   :  { %v4944_v33 = vpack.c.bf16 %v1213_v8, %v1212_v1 }
 0x1b8   :  { %v1037_v10 = vpop.f32.mrb[52].mxu0  ;;  %v2449_v5 = vpack.c.bf16 %v2334_v40, %v2333_v17  ;;  %v4968_v40 = vpop.permute.xlu1 %511 }
 0x1b9   :  { %v2158_v41 = vpop.f32.mrb[52].mxu1  ;;  %v1039_v51 = vpop.f32.mrb[53].mxu0  ;;  %v1038_v11 = vadd.f32 %v1037_v10, %v4351_v48  ;;  %v5280_v10 = vld [vmem:[#allocation15_spill] sm:$0xff] }
 0x1ba   :  { %v2160_v36 = vpop.f32.mrb[53].mxu1  ;;  %v2159_v61 = vadd.f32 %v2158_v41, %v4810_v52  ;;  %3218 = vmatprep.subr.bf16.mxu0 %v2449_v5  ;;  %v1040_v4 = vpop.f32.mrb[54].mxu0 }
 0x1bb   :  { %v1041_v60 = vadd.f32 %v1040_v4, %v4349_v46  ;;  %v2161_v53 = vpop.f32.mrb[54].mxu1  ;;  %3219 = vmatpush3.bf16.msra.mxu0 %v4875_v0  ;;  %v1042_v22 = vpop.f32.mrb[55].mxu0  ;;  %v1214_v62 = vmax.f32 %v1038_v11, 0.0  ;;  %v5281_v11 = vld [vmem:[#allocation14_spill] sm:$0xff] }
 0x1bc   :  { %v2162_v55 = vadd.f32 %v2161_v53, %v4827_v49  ;;  %v2163_v19 = vpop.f32.mrb[55].mxu1  ;;  %v2335_v48 = vmax.f32 %v2159_v61, 0.0  ;;  %v4971_v41 = vpop.permute.xlu0 %506 }
 0x1bd   :  { %v1215_v3 = vmax.f32 %v1041_v60, 0.0 }
 0x1be   :  { %v2336_v47 = vmax.f32 %v2162_v55, 0.0 }
 0x1bf   :  { %v4955_v52 = vpack.c.bf16 %v1215_v3, %v1214_v62  ;;  %v4977_v3 = vpop.permute.xlu1 %521 }
 0x1c0   :  { %v1045_v2 = vpop.f32.mrb[56].mxu0  ;;  %v2450_v32 = vpack.c.bf16 %v2336_v47, %v2335_v48 }
 0x1c1   :  { %v2166_v46 = vpop.f32.mrb[56].mxu1  ;;  %v1047_v25 = vpop.f32.mrb[57].mxu0  ;;  %v1046_v0 = vadd.f32 %v1045_v2, %v4370_v58 }
 0x1c2   :  { %v2168_v37 = vpop.f32.mrb[57].mxu1  ;;  %v2167_v49 = vadd.f32 %v2166_v46, %v4863_v23  ;;  %3220 = vmatprep.subr.bf16.mxu0 %v2450_v32  ;;  %v1048_v24 = vpop.f32.mrb[58].mxu0  ;;  %v5282_v25 = vld [vmem:[#allocation17_spill] sm:$0xff] }
 0x1c3   :  { %v1049_v29 = vadd.f32 %v1048_v24, %v5279_v45  ;;  %v2169_v15 = vpop.f32.mrb[58].mxu1  ;;  %3221 = vmatpush3.bf16.msra.mxu0 %v4888_v39  ;;  %v1050_v26 = vpop.f32.mrb[59].mxu0  ;;  %v1216_v14 = vmax.f32 %v1046_v0, 0.0  ;;  %v5283_v37 = vld [vmem:[#allocation30_spill] sm:$0xff]  ;;  %v5284_v45 = vld [vmem:[#allocation16_spill] sm:$0xff] }
 0x1c4   :  { %v2170_v13 = vadd.f32 %v2169_v15, %v4873_v38  ;;  %v2171_v28 = vpop.f32.mrb[59].mxu1  ;;  %v2337_v20 = vmax.f32 %v2167_v49, 0.0  ;;  %v4981_v46 = vpop.permute.xlu0 %516  ;;  %v3571_v24 = vld [vmem:[#allocation8] ss:$16 sps:$4 sm:$0xff]  }
 0x1c5   :  { %v1217_v58 = vmax.f32 %v1049_v29, 0.0  ;;  %v5285_v28 = vld [vmem:[#allocation32_spill] sm:$0xff] }
 0x1c6   :  { %v2338_v43 = vmax.f32 %v2170_v13, 0.0  ;;  %v3577_v13 = vld [vmem:[#allocation8 + $0x24] ss:$16 sps:$4 sm:$0xff]  }
 0x1c7   :  { %v4966_v12 = vpack.c.bf16 %v1217_v58, %v1216_v14 }
 0x1c8   :  { %v1053_v23 = vpop.f32.mrb[60].mxu0  ;;  %v2451_v1 = vpack.c.bf16 %v2338_v43, %v2337_v20  ;;  %v3576_v20 = vld [vmem:[#allocation8 + $0xc] ss:$16 sps:$4 sm:$0xff]  }
 0x1c9   :  { %v2174_v8 = vpop.f32.mrb[60].mxu1  ;;  %v1055_v17 = vpop.f32.mrb[61].mxu0  ;;  %v1054_v39 = vadd.f32 %v1053_v23, %v5280_v10  ;;  %2646 = vmatprep.mubr.bf16.mxu1 %v3576_v20  ;;  %v5293_v20 = vld [vmem:[#allocation20_spill] sm:$0xff] }
 0x1ca   :  { %v2176_v5 = vpop.f32.mrb[61].mxu1  ;;  %v2175_v38 = vadd.f32 %v2174_v8, %v4892_v31  ;;  %3222 = vmatprep.subr.bf16.mxu0 %v2451_v1  ;;  %v1056_v51 = vpop.f32.mrb[62].mxu0 }
 0x1cb   :  { %v1057_v36 = vadd.f32 %v1056_v51, %v5281_v11  ;;  %v2177_v61 = vpop.f32.mrb[62].mxu1  ;;  %3223 = vmatpush3.bf16.msra.mxu0 %v4900_v9  ;;  %v1058_v4 = vpop.f32.mrb[63].mxu0  ;;  %v1218_v22 = vmax.f32 %v1054_v39, 0.0 }
 0x1cc   :  { %v2178_v60 = vadd.f32 %v2177_v61, %v4898_v27  ;;  %v2179_v53 = vpop.f32.mrb[63].mxu1  ;;  %v2339_v19 = vmax.f32 %v2175_v38, 0.0  ;;  %v4989_v1 = vpop.permute.xlu1 %531  ;;  %v5288_v61 = vld [vmem:[#allocation34_spill] sm:$0xff] }
 0x1cd   :  { %v1219_v55 = vmax.f32 %v1057_v36, 0.0  ;;  %v4991_v10 = vpop.permute.xlu0 %526 }
 0x1ce   :  { %v2340_v62 = vmax.f32 %v2178_v60, 0.0 }
 0x1cf   :  { %v4979_v48 = vpack.c.bf16 %v1219_v55, %v1218_v22  ;;  %v5289_v22 = vld [vmem:[#allocation18_spill] sm:$0xff] }
 0x1d0   :  { %v1061_v31 = vpop.f32.mrb[64].mxu0  ;;  %v2452_v47 = vpack.c.bf16 %v2340_v62, %v2339_v19  ;;  %v3579_v62 = vld [vmem:[#allocation8 + $0x20] ss:$16 sps:$4 sm:$0xff]  }
 0x1d1   :  { %v2182_v2 = vpop.f32.mrb[64].mxu1  ;;  %v1063_v32 = vpop.f32.mrb[65].mxu0  ;;  %v1062_v9 = vadd.f32 %v1061_v31, %v5282_v25  ;;  %v5290_v31 = vld [vmem:[#allocation36_spill] sm:$0xff]  ;;  %v3583_v25 = vld [vmem:[#allocation8 + $0x44] ss:$16 sps:$4 sm:$0xff]  }
 0x1d2   :  { %v2184_v0 = vpop.f32.mrb[65].mxu1  ;;  %v2183_v27 = vadd.f32 %v2182_v2, %v5283_v37  ;;  %3224 = vmatprep.subr.bf16.mxu0 %v2452_v47  ;;  %v1064_v49 = vpop.f32.mrb[66].mxu0 }
 0x1d3   :  { %v1065_v29 = vadd.f32 %v1064_v49, %v5284_v45  ;;  %v2185_v15 = vpop.f32.mrb[66].mxu1  ;;  %3225 = vmatpush3.bf16.msra.mxu0 %v4906_v18  ;;  %v1066_v26 = vpop.f32.mrb[67].mxu0  ;;  %v1220_v43 = vmax.f32 %v1062_v9, 0.0  ;;  %v5286_v18 = vld [vmem:[#allocation45_spill] sm:$0xff] }
 0x1d4   :  { %v2186_v14 = vadd.f32 %v2185_v15, %v5285_v28  ;;  %v2187_v58 = vpop.f32.mrb[67].mxu1  ;;  %3290 = vmatprep.subr.bf16.mxu0 %v4914_v16  ;;  %v2341_v8 = vmax.f32 %v2183_v27, 0.0  ;;  %v5287_v16 = vld [vmem:[#allocation19_spill] sm:$0xff]  ;;  %v5005_v27 = vpop.permute.xlu1 %541 }
 0x1d5   :  { %v1221_v23 = vmax.f32 %v1065_v29, 0.0  ;;  %v5291_v29 = vld [vmem:[#allocation21_spill] sm:$0xff] }
 0x1d6   :  { %v2342_v17 = vmax.f32 %v2186_v14, 0.0  ;;  %2582 = vmatmul.mubr.bf16.vlgmr.msra.gmra.mrb[128].mxu0 %v3571_v24  ;;  %v5009_v24 = vpop.permute.xlu0 %536 }
 0x1d7   :  { %v4993_v39 = vpack.c.bf16 %v1221_v23, %v1220_v43  ;;  %3291 = vmatpush3.bf16.msra.mxu0 %v5286_v18  ;;  %2589 = vmatprep.mubr.bf16.mxu0 %v3577_v13  ;;  %v5292_v13 = vld [vmem:[#allocation38_spill] sm:$0xff]  ;;  %v5294_v18 = vld [vmem:[#allocation40_spill] sm:$0xff] }
 0x1d8   :  { %v1069_v5 = vpop.f32.mrb[68].mxu0  ;;  %v4996_v38 = vpack.c.bf16 %v2342_v17, %v2341_v8  ;;  %3292 = vmatprep.subr.bf16.mxu0 %v4921_v59  ;;  %v3585_v17 = vld [vmem:[#allocation8 + $0x40] ss:$16 sps:$4 sm:$0xff]  }
 0x1d9   :  { %v1070_v51 = vadd.f32 %v1069_v5, %v5287_v16  ;;  %v2190_v11 = vpop.f32.mrb[68].mxu1  ;;  %v1071_v36 = vpop.f32.mrb[69].mxu0  ;;  %v3589_v16 = vld [vmem:[#allocation8 + $0x64] ss:$16 sps:$4 sm:$0xff]  }
 0x1da   :  { %v2191_v4 = vadd.f32 %v2190_v11, %v5288_v61  ;;  %v2192_v60 = vpop.f32.mrb[69].mxu1  ;;  %v1072_v53 = vpop.f32.mrb[70].mxu0 }
 0x1db   :  { %v1073_v55 = vadd.f32 %v1072_v53, %v5289_v22  ;;  %v2193_v19 = vpop.f32.mrb[70].mxu1  ;;  %3293 = vmatpush3.bf16.msra.mxu0 %v4806_v30  ;;  %v1074_v32 = vpop.f32.mrb[71].mxu0  ;;  %v1222_v59 = vmax.f32 %v1070_v51, 0.0  ;;  %v5295_v22 = vld [vmem:[#allocation23_spill] sm:$0xff] }
 0x1dc   :  { %v2194_v47 = vadd.f32 %v2193_v19, %v5290_v31  ;;  %v2195_v2 = vpop.f32.mrb[71].mxu1  ;;  %3294 = vmatprep.subr.bf16.mxu0 %v4928_v7  ;;  %v2343_v0 = vmax.f32 %v2191_v4, 0.0  ;;  %v5021_v61 = vpop.permute.xlu1 %551  ;;  %v5297_v32 = vld [vmem:[#allocation22_spill] sm:$0xff] }
 0x1dd   :  { %v1223_v9 = vmax.f32 %v1073_v55, 0.0  ;;  %v5025_v60 = vpop.permute.xlu0 %546 }
 0x1de   :  { %v2344_v37 = vmax.f32 %v2194_v47, 0.0  ;;  %2590 = vmatmul.mubr.bf16.gmra.mrb[132].mxu0 %v3579_v62  ;;  %v5296_v62 = vld [vmem:[#allocation42_spill] sm:$0xff] }
 0x1df   :  { %v5007_v49 = vpack.c.bf16 %v1223_v9, %v1222_v59  ;;  %3295 = vmatpush3.bf16.msra.mxu0 %v4834_v35  ;;  %2597 = vmatprep.mubr.bf16.mxu0 %v3583_v25 }
 0x1e0   :  { %v5011_v45 = vpack.c.bf16 %v2344_v37, %v2343_v0  ;;  %v1077_v30 = vpop.f32.mrb[72].mxu0  ;;  %3296 = vmatprep.subr.bf16.mxu0 %v4935_v34  ;;  %v3591_v0 = vld [vmem:[#allocation8 + $0x60] ss:$16 sps:$4 sm:$0xff]  }
 0x1e1   :  { %v1078_v15 = vadd.f32 %v1077_v30, %v5291_v29  ;;  %v2198_v7 = vpop.f32.mrb[72].mxu1  ;;  %v1079_v26 = vpop.f32.mrb[73].mxu0  ;;  %v5298_v37 = vld [vmem:[#allocation44_spill] sm:$0xff] }
 0x1e2   :  { %v2199_v28 = vadd.f32 %v2198_v7, %v5292_v13  ;;  %v2200_v14 = vpop.f32.mrb[73].mxu1  ;;  %v1080_v58 = vpop.f32.mrb[74].mxu0 }
 0x1e3   :  { %v1081_v43 = vadd.f32 %v1080_v58, %v5293_v20  ;;  %v2201_v23 = vpop.f32.mrb[74].mxu1  ;;  %v1082_v8 = vpop.f32.mrb[75].mxu0  ;;  %3297 = vmatpush3.bf16.msra.mxu0 %v4860_v42  ;;  %v1224_v34 = vmax.f32 %v1078_v15, 0.0 }
 0x1e4   :  { %v2202_v5 = vadd.f32 %v2201_v23, %v5294_v18  ;;  %v2203_v35 = vpop.f32.mrb[75].mxu1  ;;  %3298 = vmatprep.subr.bf16.mxu0 %v4944_v33  ;;  %v2345_v11 = vmax.f32 %v2199_v28, 0.0  ;;  %v5040_v28 = vpop.permute.xlu1 %561  ;;  %v5300_v23 = vld [vmem:[#allocation25_spill] sm:$0xff]  ;;  %v5301_v18 = vld [vmem:[#allocation47_spill] sm:$0xff] }
 0x1e5   :  { %v1225_v51 = vmax.f32 %v1081_v43, 0.0  ;;  %v5044_v58 = vpop.permute.xlu0 %556 }
 0x1e6   :  { %v2346_v36 = vmax.f32 %v2202_v5, 0.0  ;;  %2598 = vmatmul.mubr.bf16.gmra.mrb[136].mxu0 %v3585_v17 }
 0x1e7   :  { %v5023_v4 = vpack.c.bf16 %v1225_v51, %v1224_v34  ;;  %3299 = vmatpush3.bf16.msra.mxu0 %v4877_v57  ;;  %2605 = vmatprep.mubr.bf16.mxu0 %v3589_v16  ;;  %v5299_v57 = vld [vmem:[#allocation57_spill] sm:$0xff]  ;;  %v5302_v34 = vld [vmem:[#allocation24_spill] sm:$0xff] }
 0x1e8   :  { %v5027_v53 = vpack.c.bf16 %v2346_v36, %v2345_v11  ;;  %v1085_v42 = vpop.f32.mrb[76].mxu0  ;;  %3300 = vmatprep.subr.bf16.mxu0 %v4955_v52  ;;  %v3597_v52 = vld [vmem:[%s5227_s6 + $0x4] ss:$16 sps:$4 sm:$0xff]  }
 0x1e9   :  { %v1086_v55 = vadd.f32 %v1085_v42, %v5295_v22  ;;  %v2206_v33 = vpop.f32.mrb[76].mxu1  ;;  %v1087_v19 = vpop.f32.mrb[77].mxu0  ;;  %v5303_v42 = vld [vmem:[#allocation49_spill] sm:$0xff] }
 0x1ea   :  { %v2207_v31 = vadd.f32 %v2206_v33, %v5296_v62  ;;  %v2208_v47 = vpop.f32.mrb[77].mxu1  ;;  %v1088_v2 = vpop.f32.mrb[78].mxu0 }
 0x1eb   :  { %v1089_v25 = vadd.f32 %v1088_v2, %v5297_v32  ;;  %v2209_v59 = vpop.f32.mrb[78].mxu1  ;;  %v1090_v9 = vpop.f32.mrb[79].mxu0  ;;  %3301 = vmatpush3.bf16.msra.mxu0 %v5299_v57  ;;  %v1226_v15 = vmax.f32 %v1086_v55, 0.0  ;;  %v3601_v55 = vld [vmem:[%s5227_s6 + $0x24] ss:$16 sps:$4 sm:$0xff]  }
 0x1ec   :  { %v2210_v30 = vadd.f32 %v2209_v59, %v5298_v37  ;;  %v2211_v29 = vpop.f32.mrb[79].mxu1  ;;  %3302 = vmatprep.subr.bf16.mxu0 %v4966_v12  ;;  %v2347_v26 = vmax.f32 %v2207_v31, 0.0  ;;  %v487_v47 = vpop.permute.xlu1 %486 }
 0x1ed   :  { %v1227_v7 = vmax.f32 %v1089_v25, 0.0  ;;  %v5063_v32 = vpop.permute.xlu0 %566 }
 0x1ee   :  { %v2348_v13 = vmax.f32 %v2210_v30, 0.0  ;;  %2606 = vmatmul.mubr.bf16.gmra.mrb[140].mxu0 %v3591_v0  ;;  %v5305_v30 = vld [vmem:[#allocation51_spill] sm:$0xff] }
 0x1ef   :  { %v5042_v14 = vpack.c.bf16 %v1227_v7, %v1226_v15  ;;  %3303 = vmatpush3.bf16.msra.mxu0 %v4902_v54  ;;  %2791 = vmatprep.mubr.bf16.mxu0 %v3597_v52  ;;  %v3595_v54 = vld [vmem:[%s5227_s6] ss:$16 sps:$4 sm:$0xff]  }
 0x1f0   :  { %v5046_v20 = vpack.c.bf16 %v2348_v13, %v2347_v26  ;;  %v1093_v43 = vpop.f32.mrb[80].mxu0  ;;  %3304 = vmatprep.subr.bf16.mxu0 %v4979_v48  ;;  %v5306_v15 = vld [vmem:[#allocation26_spill] sm:$0xff] }
 0x1f1   :  { %v1094_v8 = vadd.f32 %v1093_v43, %v5300_v23  ;;  %v2214_v12 = vpop.f32.mrb[80].mxu1  ;;  %v1095_v17 = vpop.f32.mrb[81].mxu0  ;;  %v3603_v43 = vld [vmem:[%s5227_s6 + $0x20] ss:$16 sps:$4 sm:$0xff]  }
 0x1f2   :  { %v2215_v5 = vadd.f32 %v2214_v12, %v5301_v18  ;;  %v2216_v35 = vpop.f32.mrb[81].mxu1  ;;  %v1096_v16 = vpop.f32.mrb[82].mxu0  ;;  %v5307_v23 = vld [vmem:[#allocation53_spill] sm:$0xff] }
 0x1f3   :  { %v1097_v51 = vadd.f32 %v1096_v16, %v5302_v34  ;;  %v2217_v11 = vpop.f32.mrb[82].mxu1  ;;  %v1098_v36 = vpop.f32.mrb[83].mxu0  ;;  %3305 = vmatpush3.bf16.msra.mxu0 %v4908_v44  ;;  %v1228_v33 = vmax.f32 %v1094_v8, 0.0  ;;  %v5304_v44 = vld [vmem:[#allocation27_spill] sm:$0xff] }
 0x1f4   :  { %v2218_v22 = vadd.f32 %v2217_v11, %v5303_v42  ;;  %v2219_v48 = vpop.f32.mrb[83].mxu1  ;;  %v2349_v62 = vmax.f32 %v2215_v5, 0.0  ;;  %v3607_v17 = vld [vmem:[%s5227_s6 + $0x44] ss:$16 sps:$4 sm:$0xff]   ;;  %v5077_v34 = vpop.permute.xlu1 %576  ;;  %v5308_v42 = vld [vmem:[#allocation28_spill] sm:$0xff] }
 0x1f5   :  { %v1229_v19 = vmax.f32 %v1097_v51, 0.0  ;;  %v5081_v11 = vpop.permute.xlu0 %571 }
 0x1f6   :  { %v2350_v31 = vmax.f32 %v2218_v22, 0.0  ;;  %2792 = vmatmul.mubr.bf16.vlgmr.msra.gmra.mrb[144].mxu0 %v3595_v54 }
 0x1f7   :  { %v5061_v2 = vpack.c.bf16 %v1229_v19, %v1228_v33  ;;  %2799 = vmatprep.mubr.bf16.mxu0 %v3601_v55  ;;  %v5309_v33 = vld [vmem:[#allocation55_spill] sm:$0xff] }
 0x1f8   :  { %v5065_v25 = vpack.c.bf16 %v2350_v31, %v2349_v62  ;;  %v1101_v59 = vpop.f32.mrb[84].mxu0 }
 0x1f9   :  { %v1102_v9 = vadd.f32 %v1101_v59, %v5304_v44  ;;  %v2222_v0 = vpop.f32.mrb[84].mxu1  ;;  %v1103_v37 = vpop.f32.mrb[85].mxu0 }
 0x1fa   :  { %v2223_v57 = vadd.f32 %v2222_v0, %v5305_v30  ;;  %v2224_v29 = vpop.f32.mrb[85].mxu1  ;;  %v1104_v52 = vpop.f32.mrb[86].mxu0  ;;  %v3609_v0 = vld [vmem:[%s5227_s6 + $0x40] ss:$16 sps:$4 sm:$0xff]  }
 0x1fb   :  { %v1105_v7 = vadd.f32 %v1104_v52, %v5306_v15  ;;  %v2225_v26 = vpop.f32.mrb[86].mxu1  ;;  %v1106_v13 = vpop.f32.mrb[87].mxu0  ;;  %v1230_v18 = vmax.f32 %v1102_v9, 0.0  ;;  %v5310_v37 = vld [vmem:[#allocation58_spill] sm:$0xff]  ;;  %v3613_v29 = vld [vmem:[%s5227_s6 + $0x64] ss:$16 sps:$4 sm:$0xff]  }
 0x1fc   :  { %v2226_v8 = vadd.f32 %v2225_v26, %v5307_v23  ;;  %v2227_v12 = vpop.f32.mrb[87].mxu1  ;;  %v2351_v35 = vmax.f32 %v2223_v57, 0.0  ;;  %v497_v13 = vpop.permute.xlu1 %496 }
 0x1fd   :  { %v1231_v5 = vmax.f32 %v1105_v7, 0.0 }
 0x1fe   :  { %v2352_v16 = vmax.f32 %v2226_v8, 0.0  ;;  %2800 = vmatmul.mubr.bf16.gmra.mrb[148].mxu0 %v3603_v43 }
 0x1ff   :  { %v5079_v51 = vpack.c.bf16 %v1231_v5, %v1230_v18  ;;  %2807 = vmatprep.mubr.bf16.mxu0 %v3607_v17 }
 0x200   :  { %v5083_v36 = vpack.c.bf16 %v2352_v16, %v2351_v35  ;;  %v1109_v54 = vpop.f32.mrb[88].mxu0 }
 0x201   :  { %v1110_v22 = vadd.f32 %v1109_v54, %v5308_v42  ;;  %v2230_v48 = vpop.f32.mrb[88].mxu1  ;;  %v1111_v55 = vpop.f32.mrb[89].mxu0 }
 0x202   :  { %v2231_v19 = vadd.f32 %v2230_v48, %v5309_v33  ;;  %v2232_v62 = vpop.f32.mrb[89].mxu1  ;;  %v1112_v31 = vpop.f32.mrb[90].mxu0  ;;  %v3615_v48 = vld [vmem:[%s5227_s6 + $0x60] ss:$16 sps:$4 sm:$0xff]  }
 0x203   :  { %v1113_v59 = vadd.f32 %v1112_v31, %v487_v47  ;;  %v2233_v44 = vpop.f32.mrb[90].mxu1  ;;  %v1114_v9 = vpop.f32.mrb[91].mxu0  ;;  %v1232_v52 = vmax.f32 %v1110_v22, 0.0 }
 0x204   :  { %v2234_v30 = vadd.f32 %v2233_v44, %v5310_v37  ;;  %v2235_v57 = vpop.f32.mrb[91].mxu1  ;;  %v2353_v7 = vmax.f32 %v2231_v19, 0.0  ;;  %v492_v47 = vpop.permute.xlu0 %491 }
 0x205   :  { %v1233_v15 = vmax.f32 %v1113_v59, 0.0  ;;  %v5311_v57 = vld [vmem:[#allocation29_spill] sm:$0xff] }
 0x206   :  { %v2354_v26 = vmax.f32 %v2234_v30, 0.0  ;;  %2808 = vmatmul.mubr.bf16.gmra.mrb[152].mxu0 %v3609_v0 }
 0x207   :  { %v5094_v43 = vpack.c.bf16 %v1233_v15, %v1232_v52  ;;  %2815 = vmatprep.mubr.bf16.mxu0 %v3613_v29 }
 0x208   :  { %v5096_v23 = vpack.c.bf16 %v2354_v26, %v2353_v7  ;;  %v1117_v8 = vpop.f32.mrb[92].mxu0 }
 0x209   :  { %v1118_v12 = vadd.f32 %v1117_v8, %v492_v47  ;;  %v2238_v17 = vpop.f32.mrb[92].mxu1  ;;  %v1119_v18 = vpop.f32.mrb[93].mxu0 }
 0x20a   :  { %v2239_v5 = vadd.f32 %v2238_v17, %v4950_v56  ;;  %v2240_v35 = vpop.f32.mrb[93].mxu1  ;;  %v1120_v16 = vpop.f32.mrb[94].mxu0 }
 0x20b   :  { %v1121_v54 = vadd.f32 %v1120_v16, %v497_v13  ;;  %v2241_v42 = vpop.f32.mrb[94].mxu1  ;;  %v1122_v22 = vpop.f32.mrb[95].mxu0  ;;  %v1234_v19 = vmax.f32 %v1118_v12, 0.0  ;;  %v5312_v13 = vld [vmem:[#allocation31_spill] sm:$0xff] }
 0x20c   :  { %v2242_v55 = vadd.f32 %v2241_v42, %v4963_v6  ;;  %v2243_v33 = vpop.f32.mrb[95].mxu1  ;;  %v2355_v31 = vmax.f32 %v2239_v5, 0.0 }
 0x20d   :  { %v1235_v62 = vmax.f32 %v1121_v54, 0.0 }
 0x20e   :  { %v2356_v59 = vmax.f32 %v2242_v55, 0.0  ;;  %2816 = vmatmul.mubr.bf16.gmra.mrb[156].mxu0 %v3615_v48  ;;  %v5313_v48 = vld [vmem:[#allocation33_spill] sm:$0xff] }
 0x20f   :  { %v5103_v44 = vpack.c.bf16 %v1235_v62, %v1234_v19 }
 0x210   :  { %v5105_v56 = vpack.c.bf16 %v2356_v59, %v2355_v31  ;;  %v1125_v9 = vpop.f32.mrb[96].mxu0  ;;  %v5314_v59 = vld [vmem:[#allocation35_spill] sm:$0xff] }
 0x211   :  { %v1126_v0 = vadd.f32 %v1125_v9, %v4958_v63  ;;  %v2246_v37 = vpop.f32.mrb[96].mxu1  ;;  %v1127_v30 = vpop.f32.mrb[97].mxu0 }
 0x212   :  { %v2247_v29 = vadd.f32 %v2246_v37, %v5311_v57  ;;  %v2248_v52 = vpop.f32.mrb[97].mxu1  ;;  %v1128_v15 = vpop.f32.mrb[98].mxu0 }
 0x213   :  { %v1129_v6 = vadd.f32 %v1128_v15, %v4971_v41  ;;  %v2249_v7 = vpop.f32.mrb[98].mxu1  ;;  %v1130_v26 = vpop.f32.mrb[99].mxu0  ;;  %v1236_v12 = vmax.f32 %v1126_v0, 0.0 }
 0x214   :  { %v2250_v47 = vadd.f32 %v2249_v7, %v5312_v13  ;;  %v2251_v8 = vpop.f32.mrb[99].mxu1  ;;  %v2357_v18 = vmax.f32 %v2247_v29, 0.0 }
 0x215   :  { %v1237_v17 = vmax.f32 %v1129_v6, 0.0 }
 0x216   :  { %v2358_v5 = vmax.f32 %v2250_v47, 0.0 }
 0x217   :  { %v5111_v35 = vpack.c.bf16 %v1237_v17, %v1236_v12 }
 0x218   :  { %v2461_v63 = vpack.c.bf16 %v2358_v5, %v2357_v18  ;;  %v1133_v16 = vpop.f32.mrb[100].mxu0  ;;  %v5316_v18 = vld [vmem:[#allocation39_spill] sm:$0xff] }
 0x219   :  { %v1134_v54 = vadd.f32 %v1133_v16, %v4968_v40  ;;  %v2254_v42 = vpop.f32.mrb[100].mxu1  ;;  %v1135_v22 = vpop.f32.mrb[101].mxu0 }
 0x21a   :  { %v2255_v55 = vadd.f32 %v2254_v42, %v5313_v48  ;;  %v2256_v41 = vpop.f32.mrb[101].mxu1  ;;  %3250 = vmatprep.subr.bf16.mxu1 %v2461_v63  ;;  %v1136_v33 = vpop.f32.mrb[102].mxu0 }
 0x21b   :  { %v1137_v19 = vadd.f32 %v1136_v33, %v4981_v46  ;;  %v2257_v62 = vpop.f32.mrb[102].mxu1  ;;  %3251 = vmatpush3.bf16.msra.mxu1 %v4996_v38  ;;  %v1138_v31 = vpop.f32.mrb[103].mxu0  ;;  %v1238_v37 = vmax.f32 %v1134_v54, 0.0  ;;  %v5315_v46 = vld [vmem:[#allocation37_spill] sm:$0xff] }
 0x21c   :  { %v2258_v9 = vadd.f32 %v2257_v62, %v5314_v59  ;;  %v2259_v0 = vpop.f32.mrb[103].mxu1  ;;  %v2359_v57 = vmax.f32 %v2255_v55, 0.0 }
 0x21d   :  { %v1239_v30 = vmax.f32 %v1137_v19, 0.0 }
 0x21e   :  { %v2360_v40 = vmax.f32 %v2258_v9, 0.0 }
 0x21f   :  { %v5118_v29 = vpack.c.bf16 %v1239_v30, %v1238_v37  ;;  %v5318_v37 = vld [vmem:[#allocation43_spill] sm:$0xff] }
 0x220   :  { %v2462_v52 = vpack.c.bf16 %v2360_v40, %v2359_v57  ;;  %v1141_v15 = vpop.f32.mrb[104].mxu0 }
 0x221   :  { %v1142_v6 = vadd.f32 %v1141_v15, %v4977_v3  ;;  %v2262_v7 = vpop.f32.mrb[104].mxu1  ;;  %v1143_v26 = vpop.f32.mrb[105].mxu0 }
 0x222   :  { %v2263_v13 = vadd.f32 %v2262_v7, %v5315_v46  ;;  %v2264_v47 = vpop.f32.mrb[105].mxu1  ;;  %3252 = vmatprep.subr.bf16.mxu1 %v2462_v52  ;;  %v1144_v38 = vpop.f32.mrb[106].mxu0 }
 0x223   :  { %v1145_v8 = vadd.f32 %v1144_v38, %v4991_v10  ;;  %v2265_v12 = vpop.f32.mrb[106].mxu1  ;;  %3253 = vmatpush3.bf16.msra.mxu1 %v5011_v45  ;;  %v1146_v17 = vpop.f32.mrb[107].mxu0  ;;  %v1240_v16 = vmax.f32 %v1142_v6, 0.0  ;;  %v5317_v10 = vld [vmem:[#allocation41_spill] sm:$0xff] }
 0x224   :  { %v2266_v5 = vadd.f32 %v2265_v12, %v5316_v18  ;;  %v2267_v63 = vpop.f32.mrb[107].mxu1  ;;  %v2361_v42 = vmax.f32 %v2263_v13, 0.0 }
 0x225   :  { %v1241_v54 = vmax.f32 %v1145_v8, 0.0 }
 0x226   :  { %v2362_v3 = vmax.f32 %v2266_v5, 0.0  ;;  %v5320_v5 = vld [vmem:[#allocation48_spill] sm:$0xff] }
 0x227   :  { %v5125_v22 = vpack.c.bf16 %v1241_v54, %v1240_v16 }
 0x228   :  { %v2463_v48 = vpack.c.bf16 %v2362_v3, %v2361_v42  ;;  %v1149_v55 = vpop.f32.mrb[108].mxu0 }
 0x229   :  { %v1150_v41 = vadd.f32 %v1149_v55, %v4989_v1  ;;  %v2270_v33 = vpop.f32.mrb[108].mxu1  ;;  %v1151_v19 = vpop.f32.mrb[109].mxu0 }
 0x22a   :  { %v2271_v62 = vadd.f32 %v2270_v33, %v5317_v10  ;;  %v2272_v31 = vpop.f32.mrb[109].mxu1  ;;  %3254 = vmatprep.subr.bf16.mxu1 %v2463_v48  ;;  %v1152_v45 = vpop.f32.mrb[110].mxu0 }
 0x22b   :  { %v1153_v59 = vadd.f32 %v1152_v45, %v5009_v24  ;;  %v2273_v9 = vpop.f32.mrb[110].mxu1  ;;  %3255 = vmatpush3.bf16.msra.mxu1 %v5027_v53  ;;  %v1154_v0 = vpop.f32.mrb[111].mxu0  ;;  %v1242_v40 = vmax.f32 %v1150_v41, 0.0  ;;  %v5319_v24 = vld [vmem:[#allocation46_spill] sm:$0xff] }
 0x22c   :  { %v2274_v30 = vadd.f32 %v2273_v9, %v5318_v37  ;;  %v2275_v57 = vpop.f32.mrb[111].mxu1  ;;  %v2363_v15 = vmax.f32 %v2271_v62, 0.0  ;;  %v5322_v0 = vld [vmem:[#allocation52_spill] sm:$0xff] }
 0x22d   :  { %v1243_v52 = vmax.f32 %v1153_v59, 0.0 }
 0x22e   :  { %v2364_v1 = vmax.f32 %v2274_v30, 0.0 }
 0x22f   :  { %v5132_v6 = vpack.c.bf16 %v1243_v52, %v1242_v40 }
 0x230   :  { %v2464_v7 = vpack.c.bf16 %v2364_v1, %v2363_v15  ;;  %v1157_v26 = vpop.f32.mrb[112].mxu0 }
 0x231   :  { %v1158_v46 = vadd.f32 %v1157_v26, %v5005_v27  ;;  %v2278_v13 = vpop.f32.mrb[112].mxu1  ;;  %v1159_v47 = vpop.f32.mrb[113].mxu0 }
 0x232   :  { %v2279_v38 = vadd.f32 %v2278_v13, %v5319_v24  ;;  %v2280_v8 = vpop.f32.mrb[113].mxu1  ;;  %3256 = vmatprep.subr.bf16.mxu1 %v2464_v7  ;;  %v1160_v53 = vpop.f32.mrb[114].mxu0 }
 0x233   :  { %v1161_v12 = vadd.f32 %v1160_v53, %v5025_v60  ;;  %v2281_v17 = vpop.f32.mrb[114].mxu1  ;;  %3257 = vmatpush3.bf16.msra.mxu1 %v5046_v20  ;;  %v1162_v18 = vpop.f32.mrb[115].mxu0  ;;  %v1244_v54 = vmax.f32 %v1158_v46, 0.0  ;;  %v5321_v60 = vld [vmem:[#allocation50_spill] sm:$0xff] }
 0x234   :  { %v2282_v63 = vadd.f32 %v2281_v17, %v5320_v5  ;;  %v2283_v16 = vpop.f32.mrb[115].mxu1  ;;  %v2365_v3 = vmax.f32 %v2279_v38, 0.0 }
 0x235   :  { %v1245_v42 = vmax.f32 %v1161_v12, 0.0  ;;  %v5324_v12 = vld [vmem:[#allocation56_spill] sm:$0xff] }
 0x236   :  { %v2366_v27 = vmax.f32 %v2282_v63, 0.0 }
 0x237   :  { %v5139_v48 = vpack.c.bf16 %v1245_v42, %v1244_v54 }
 0x238   :  { %v2465_v55 = vpack.c.bf16 %v2366_v27, %v2365_v3  ;;  %v1165_v41 = vpop.f32.mrb[116].mxu0 }
 0x239   :  { %v1166_v33 = vadd.f32 %v1165_v41, %v5021_v61  ;;  %v2286_v19 = vpop.f32.mrb[116].mxu1  ;;  %v1167_v10 = vpop.f32.mrb[117].mxu0 }
 0x23a   :  { %v2287_v62 = vadd.f32 %v2286_v19, %v5321_v60  ;;  %v2288_v31 = vpop.f32.mrb[117].mxu1  ;;  %3258 = vmatprep.subr.bf16.mxu1 %v2465_v55  ;;  %v1168_v20 = vpop.f32.mrb[118].mxu0 }
 0x23b   :  { %v1169_v45 = vadd.f32 %v1168_v20, %v5044_v58  ;;  %v2289_v59 = vpop.f32.mrb[118].mxu1  ;;  %3259 = vmatpush3.bf16.msra.mxu1 %v5065_v25  ;;  %v1170_v9 = vpop.f32.mrb[119].mxu0  ;;  %v1246_v57 = vmax.f32 %v1166_v33, 0.0  ;;  %v5323_v58 = vld [vmem:[#allocation54_spill] sm:$0xff] }
 0x23c   :  { %v2290_v37 = vadd.f32 %v2289_v59, %v5322_v0  ;;  %v2291_v30 = vpop.f32.mrb[119].mxu1  ;;  %v2367_v52 = vmax.f32 %v2287_v62, 0.0 }
 0x23d   :  { %v1247_v40 = vmax.f32 %v1169_v45, 0.0 }
 0x23e   :  { %v2368_v61 = vmax.f32 %v2290_v37, 0.0  ;;  %v3580_v37 = vld [vmem:[#allocation8 + $0x2c] ss:$16 sps:$4 sm:$0xff]  }
 0x23f   :  { %v5146_v15 = vpack.c.bf16 %v1247_v40, %v1246_v57 }
 0x240   :  { %v2466_v1 = vpack.c.bf16 %v2368_v61, %v2367_v52  ;;  %v1173_v7 = vpop.f32.mrb[120].mxu0 }
 0x241   :  { %v1174_v26 = vadd.f32 %v1173_v7, %v5040_v28  ;;  %v2294_v46 = vpop.f32.mrb[120].mxu1  ;;  %v1175_v13 = vpop.f32.mrb[121].mxu0 }
 0x242   :  { %v2295_v47 = vadd.f32 %v2294_v46, %v5323_v58  ;;  %v2296_v24 = vpop.f32.mrb[121].mxu1  ;;  %3260 = vmatprep.subr.bf16.mxu1 %v2466_v1  ;;  %v1176_v25 = vpop.f32.mrb[122].mxu0 }
 0x243   :  { %v1177_v38 = vadd.f32 %v1176_v25, %v5063_v32  ;;  %v2297_v8 = vpop.f32.mrb[122].mxu1  ;;  %3261 = vmatpush3.bf16.msra.mxu1 %v5083_v36  ;;  %v1178_v53 = vpop.f32.mrb[123].mxu0  ;;  %v1248_v5 = vmax.f32 %v1174_v26, 0.0 }
 0x244   :  { %v2298_v17 = vadd.f32 %v2297_v8, %v5324_v12  ;;  %v2299_v18 = vpop.f32.mrb[123].mxu1  ;;  %v2369_v16 = vmax.f32 %v2295_v47, 0.0 }
 0x245   :  { %v1249_v63 = vmax.f32 %v1177_v38, 0.0 }
 0x246   :  { %v2370_v28 = vmax.f32 %v2298_v17, 0.0 }
 0x247   :  { %v2419_v54 = vpack.c.bf16 %v1249_v63, %v1248_v5 }
 0x248   :  { %v2467_v42 = vpack.c.bf16 %v2370_v28, %v2369_v16  ;;  %v1181_v3 = vpop.f32.mrb[124].mxu0 }
 0x249   :  { %v1182_v27 = vadd.f32 %v1181_v3, %v5081_v11  ;;  %v2302_v55 = vpop.f32.mrb[124].mxu1  ;;  %v1183_v41 = vpop.f32.mrb[125].mxu0 }
 0x24a   :  { %v2303_v32 = vadd.f32 %v2302_v55, %v4942_v21  ;;  %v2304_v33 = vpop.f32.mrb[125].mxu1  ;;  %3262 = vmatprep.subr.bf16.mxu1 %v2467_v42  ;;  %v1184_v36 = vpop.f32.mrb[126].mxu0  ;;  %v3574_v21 = vld [vmem:[#allocation8 + $0x8] ss:$16 sps:$4 sm:$0xff]  }
 0x24b   :  { %v1185_v19 = vadd.f32 %v1184_v36, %v5077_v34  ;;  %v2305_v10 = vpop.f32.mrb[126].mxu1  ;;  %3263 = vmatpush3.bf16.msra.mxu1 %v5096_v23  ;;  %v1186_v60 = vpop.f32.mrb[127].mxu0  ;;  %v1250_v20 = vmax.f32 %v1182_v27, 0.0  ;;  %v3586_v34 = vld [vmem:[#allocation8 + $0x4c] ss:$16 sps:$4 sm:$0xff]  }
 0x24c   :  { %v2306_v62 = vadd.f32 %v2305_v10, %v4953_v50  ;;  %v2307_v31 = vpop.f32.mrb[127].mxu1  ;;  %v2371_v59 = vmax.f32 %v2303_v32, 0.0  ;;  %v3582_v50 = vld [vmem:[#allocation8 + $0x28] ss:$16 sps:$4 sm:$0xff]  }
 0x24d   :  { %v1251_v45 = vmax.f32 %v1185_v19, 0.0  ;;  %v3588_v23 = vld [vmem:[#allocation8 + $0x48] ss:$16 sps:$4 sm:$0xff]  }
 0x24e   :  { %v2372_v11 = vmax.f32 %v2306_v62, 0.0 }
 0x24f   :  { %v2420_v9 = vpack.c.bf16 %v1251_v45, %v1250_v20 }
 0x250   :  { %v2468_v0 = vpack.c.bf16 %v2372_v11, %v2371_v59 }
 0x252   :  { %3264 = vmatprep.subr.bf16.mxu1 %v2468_v0 }
 0x253   :  { %3265 = vmatpush3.bf16.msra.mxu1 %v5105_v56  ;;  %v3592_v56 = vld [vmem:[#allocation8 + $0x6c] ss:$16 sps:$4 sm:$0xff]  }
 0x254   :  { %3330 = vmatprep.subr.bf16.mxu1 %v5111_v35  ;;  %v3618_v35 = vld [vmem:[%s5227_s6 + $0x68] ss:$16 sps:$4 sm:$0xff]  }
 0x256   :  { %2647 = vmatmul.mubr.bf16.vlgmr.msra.gmra.mrb[128].mxu1 %v3574_v21 }
 0x257   :  { %3331 = vmatpush3.bf16.msra.mxu1 %v4993_v39  ;;  %2654 = vmatprep.mubr.bf16.mxu1 %v3580_v37  ;;  %v3594_v39 = vld [vmem:[#allocation8 + $0x68] ss:$16 sps:$4 sm:$0xff]  }
 0x258   :  { %3332 = vmatprep.subr.bf16.mxu1 %v5118_v29 }
 0x25b   :  { %3333 = vmatpush3.bf16.msra.mxu1 %v5007_v49  ;;  %v3600_v49 = vld [vmem:[%s5227_s6 + $0xc] ss:$16 sps:$4 sm:$0xff]  }
 0x25c   :  { %3334 = vmatprep.subr.bf16.mxu1 %v5125_v22 }
 0x25e   :  { %2655 = vmatmul.mubr.bf16.gmra.mrb[132].mxu1 %v3582_v50 }
 0x25f   :  { %3335 = vmatpush3.bf16.msra.mxu1 %v5023_v4  ;;  %2662 = vmatprep.mubr.bf16.mxu1 %v3586_v34  ;;  %v3598_v4 = vld [vmem:[%s5227_s6 + $0x8] ss:$16 sps:$4 sm:$0xff]  }
 0x260   :  { %3336 = vmatprep.subr.bf16.mxu1 %v5132_v6 }
 0x263   :  { %3337 = vmatpush3.bf16.msra.mxu1 %v5042_v14  ;;  %v3604_v14 = vld [vmem:[%s5227_s6 + $0x2c] ss:$16 sps:$4 sm:$0xff]  }
 0x264   :  { %3338 = vmatprep.subr.bf16.mxu1 %v5139_v48 }
 0x266   :  { %2663 = vmatmul.mubr.bf16.gmra.mrb[136].mxu1 %v3588_v23 }
 0x267   :  { %3339 = vmatpush3.bf16.msra.mxu1 %v5061_v2  ;;  %2670 = vmatprep.mubr.bf16.mxu1 %v3592_v56  ;;  %v3606_v2 = vld [vmem:[%s5227_s6 + $0x28] ss:$16 sps:$4 sm:$0xff]  }
 0x268   :  { %3340 = vmatprep.subr.bf16.mxu1 %v5146_v15 }
 0x26b   :  { %3341 = vmatpush3.bf16.msra.mxu1 %v5079_v51  ;;  %v3610_v51 = vld [vmem:[%s5227_s6 + $0x4c] ss:$16 sps:$4 sm:$0xff]  }
 0x26c   :  { %3342 = vmatprep.subr.bf16.mxu1 %v2419_v54 }
 0x26e   :  { %2671 = vmatmul.mubr.bf16.gmra.mrb[140].mxu1 %v3594_v39 }
 0x26f   :  { %3343 = vmatpush3.bf16.msra.mxu1 %v5094_v43  ;;  %2856 = vmatprep.mubr.bf16.mxu1 %v3600_v49  ;;  %v3612_v43 = vld [vmem:[%s5227_s6 + $0x48] ss:$16 sps:$4 sm:$0xff]  }
 0x270   :  { %3344 = vmatprep.subr.bf16.mxu1 %v2420_v9 }
 0x273   :  { %3345 = vmatpush3.bf16.msra.mxu1 %v5103_v44  ;;  %v3616_v44 = vld [vmem:[%s5227_s6 + $0x6c] ss:$16 sps:$4 sm:$0xff]   ;;  %s3719_s6 = smov [#allocation9]  }
 0x274   :  { %s3040_s18 = sshll.u32 %s3719_s6, 4  ;;  %s3041_s18 = int_to_ptr.vmem [resolvable:$true] %s3040_s18 }
 0x275   :  { %s3685_s19 = scalar_lea.vmem %s3041_s18, 16  ;;  %s3689_s21 = scalar_lea.vmem %s3041_s18, 32 }
 0x276   :  { %2857 = vmatmul.mubr.bf16.vlgmr.msra.gmra.mrb[144].mxu1 %v3598_v4  ;;  %p3686_p10 = scmp.ne.s32.totalorder %s3041_s18, %s3685_s19  ;;  %p3690_p11 = scmp.lt.s32.totalorder %s3041_s18, %s3041_s18 }
 0x277   :  { %2864 = vmatprep.mubr.bf16.mxu1 %v3604_v14  ;;  %p3691_p12 = scmp.lt.s32.totalorder %s3689_s21, %s3685_s19 }
 0x279   :  { %p3692_p13 = por %p3691_p12, %p3690_p11 }
 0x27b   :  { %p3693_p0 = pnand %p3692_p13, %p3686_p10 }
 0x27e   :  { %2865 = vmatmul.mubr.bf16.gmra.mrb[148].mxu1 %v3606_v2 }
 0x27f   :  { %2872 = vmatprep.mubr.bf16.mxu1 %v3610_v51 }
 0x286   :  { %2873 = vmatmul.mubr.bf16.gmra.mrb[152].mxu1 %v3612_v43 }
 0x287   :  { %2880 = vmatprep.mubr.bf16.mxu1 %v3616_v44 }
 0x28e   :  { %2881 = vmatmul.mubr.bf16.gmra.mrb[156].mxu1 %v3618_v35 }
 0x2a9   :  { %v3226_v29 = vpop.f32.mrb[128].mxu0 }
 0x2aa   :  { %v3227_v22 = vpop.f32.mrb[129].mxu0 }
 0x2ab   :  { %v3228_v6 = vadd.f32 %v3227_v22, %v3226_v29  ;;  %v3229_v48 = vpop.f32.mrb[130].mxu0 }
 0x2ac   :  { %v3230_v30 = vpop.f32.mrb[131].mxu0 }
 0x2ad   :  { %v3231_v57 = vadd.f32 %v3230_v30, %v3229_v48 }
 0x2b1   :  { %v3232_v40 = vpop.f32.mrb[132].mxu0 }
 0x2b2   :  { %v3233_v52 = vpop.f32.mrb[133].mxu0 }
 0x2b3   :  { %v3234_v61 = vadd.f32 %v3233_v52, %v3232_v40  ;;  %v3235_v15 = vpop.f32.mrb[134].mxu0 }
 0x2b4   :  { %v3236_v1 = vpop.f32.mrb[135].mxu0 }
 0x2b5   :  { %v3237_v7 = vadd.f32 %v3236_v1, %v3235_v15 }
 0x2b9   :  { %v3238_v26 = vpop.f32.mrb[136].mxu0 }
 0x2ba   :  { %v3239_v46 = vpop.f32.mrb[137].mxu0 }
 0x2bb   :  { %v3240_v13 = vadd.f32 %v3239_v46, %v3238_v26  ;;  %v3241_v58 = vpop.f32.mrb[138].mxu0 }
 0x2bc   :  { %v3242_v47 = vpop.f32.mrb[139].mxu0 }
 0x2bd   :  { %v3243_v24 = vadd.f32 %v3242_v47, %v3241_v58 }
 0x2c1   :  { %v3244_v25 = vpop.f32.mrb[140].mxu0 }
 0x2c2   :  { %v3245_v38 = vpop.f32.mrb[141].mxu0 }
 0x2c3   :  { %v5197_v8 = vadd.f32 %v3245_v38, %v3244_v25  ;;  %v3247_v53 = vpop.f32.mrb[142].mxu0  ;;  %v2900_v25 = vpop.permute.xlu0 %2899 }
 0x2c4   :  { %v3248_v12 = vpop.f32.mrb[143].mxu0 }
 0x2c5   :  { %v5199_v17 = vadd.f32 %v3248_v12, %v3247_v53 }
 0x2c9   :  { %v3306_v18 = vpop.f32.mrb[144].mxu0 }
 0x2ca   :  { %v3307_v5 = vpop.f32.mrb[145].mxu0 }
 0x2cb   :  { %v3308_v63 = vadd.f32 %v3307_v5, %v3306_v18  ;;  %v3309_v16 = vpop.f32.mrb[146].mxu0 }
 0x2cc   :  { %v3310_v28 = vpop.f32.mrb[147].mxu0 }
 0x2cd   :  { %v3311_v54 = vadd.f32 %v3310_v28, %v3309_v16  ;;  %v2910_v28 = vpop.permute.xlu0 %2909 }
 0x2d1   :  { %v3312_v42 = vpop.f32.mrb[148].mxu0 }
 0x2d2   :  { %v3313_v3 = vpop.f32.mrb[149].mxu0 }
 0x2d3   :  { %v3314_v27 = vadd.f32 %v3313_v3, %v3312_v42  ;;  %v3315_v55 = vpop.f32.mrb[150].mxu0 }
 0x2d4   :  { %v3316_v41 = vpop.f32.mrb[151].mxu0 }
 0x2d5   :  { %v3317_v32 = vadd.f32 %v3316_v41, %v3315_v55 }
 0x2d9   :  { %v3318_v33 = vpop.f32.mrb[152].mxu0 }
 0x2da   :  { %v3319_v36 = vpop.f32.mrb[153].mxu0 }
 0x2db   :  { %v3320_v19 = vadd.f32 %v3319_v36, %v3318_v33  ;;  %v3321_v10 = vpop.f32.mrb[154].mxu0 }
 0x2dc   :  { %v3322_v60 = vpop.f32.mrb[155].mxu0 }
 0x2dd   :  { %v3323_v62 = vadd.f32 %v3322_v60, %v3321_v10 }
 0x2e1   :  { %v3324_v31 = vpop.f32.mrb[156].mxu0 }
 0x2e2   :  { %v3325_v20 = vpop.f32.mrb[157].mxu0 }
 0x2e3   :  { %v3326_v45 = vadd.f32 %v3325_v20, %v3324_v31  ;;  %v3327_v59 = vpop.f32.mrb[158].mxu0 }
 0x2e4   :  { %v3328_v11 = vpop.f32.mrb[159].mxu0 }
 0x2e5   :  { %v3329_v9 = vadd.f32 %v3328_v11, %v3327_v59 }
 0x329   :  { %v3266_v0 = vpop.f32.mrb[128].mxu1 }
 0x32a   :  { %v3267_v21 = vpop.f32.mrb[129].mxu1 }
 0x32b   :  { %v3268_v37 = vadd.f32 %v3267_v21, %v3266_v0  ;;  %v3269_v50 = vpop.f32.mrb[130].mxu1 }
 0x32c   :  { %v3270_v34 = vpop.f32.mrb[131].mxu1 }
 0x32d   :  { %v2649_v23 = vadd.f32 %v3268_v37, %v3228_v6  ;;  %v3271_v56 = vadd.f32 %v3270_v34, %v3269_v50 }
 0x32f   :  { %v2652_v39 = vadd.f32 %v3271_v56, %v3231_v57  ;;  %v2794_v49 = vadd.f32 %v3308_v63, %v2649_v23  ;;  %v2905_v57 = vpop.permute.xlu1 %2904 }
 0x331   :  { %v3272_v4 = vpop.f32.mrb[132].mxu1  ;;  %v2797_v14 = vadd.f32 %v3311_v54, %v2652_v39 }
 0x332   :  { %v3273_v2 = vpop.f32.mrb[133].mxu1 }
 0x333   :  { %v3274_v51 = vadd.f32 %v3273_v2, %v3272_v4  ;;  %v3275_v43 = vpop.f32.mrb[134].mxu1 }
 0x334   :  { %v3276_v44 = vpop.f32.mrb[135].mxu1 }
 0x335   :  { %v2657_v35 = vadd.f32 %v3274_v51, %v3234_v61  ;;  %v3277_v29 = vadd.f32 %v3276_v44, %v3275_v43 }
 0x337   :  { %v2660_v22 = vadd.f32 %v3277_v29, %v3237_v7  ;;  %v2802_v48 = vadd.f32 %v3314_v27, %v2657_v35  ;;  %v2915_v7 = vpop.permute.xlu1 %2914 }
 0x339   :  { %v3278_v30 = vpop.f32.mrb[136].mxu1  ;;  %v2805_v40 = vadd.f32 %v3317_v32, %v2660_v22  ;;  %v2964_v32 = vpop.permute.xlu0 %2963 }
 0x33a   :  { %v3279_v52 = vpop.f32.mrb[137].mxu1 }
 0x33b   :  { %v3280_v15 = vadd.f32 %v3279_v52, %v3278_v30  ;;  %v3281_v1 = vpop.f32.mrb[138].mxu1  ;;  %v2969_v27 = vpop.permute.xlu1 %2968 }
 0x33c   :  { %v3282_v26 = vpop.f32.mrb[139].mxu1 }
 0x33d   :  { %v2665_v6 = vadd.f32 %v3280_v15, %v3240_v13  ;;  %v3283_v46 = vadd.f32 %v3282_v26, %v3281_v1 }
 0x33f   :  { %v2668_v58 = vadd.f32 %v3283_v46, %v3243_v24  ;;  %v2810_v47 = vadd.f32 %v3320_v19, %v2665_v6 }
 0x341   :  { %v3284_v38 = vpop.f32.mrb[140].mxu1  ;;  %v2813_v53 = vadd.f32 %v3323_v62, %v2668_v58 }
 0x342   :  { %v3285_v12 = vpop.f32.mrb[141].mxu1 }
 0x343   :  { %v3286_v18 = vadd.f32 %v3285_v12, %v3284_v38  ;;  %v3287_v61 = vpop.f32.mrb[142].mxu1 }
 0x344   :  { %v3288_v5 = vpop.f32.mrb[143].mxu1 }
 0x345   :  { %v2673_v63 = vadd.f32 %v3286_v18, %v5197_v8  ;;  %v3289_v16 = vadd.f32 %v3288_v5, %v3287_v61  ;;  %v2974_v8 = vpop.permute.xlu1 %2973 }
 0x347   :  { %v2676_v54 = vadd.f32 %v3289_v16, %v5199_v17  ;;  %v5203_v42 = vadd.f32 %v3326_v45, %v2673_v63  ;;  %v2920_v17 = vpop.permute.xlu0 %2919 }
 0x349   :  { %v3346_v13 = vpop.f32.mrb[144].mxu1  ;;  %v5205_v3 = vadd.f32 %v3329_v9, %v2676_v54  ;;  %v2979_v23 = vpop.permute.xlu1 %2978 }
 0x34a   :  { %v3347_v24 = vpop.f32.mrb[145].mxu1 }
 0x34b   :  { %v3348_v55 = vadd.f32 %v3347_v24, %v3346_v13  ;;  %v3349_v41 = vpop.f32.mrb[146].mxu1  ;;  %v2925_v4 = vpop.permute.xlu0 %2924 }
 0x34c   :  { %v3350_v33 = vpop.f32.mrb[147].mxu1 }
 0x34d   :  { %v2859_v36 = vadd.f32 %v3348_v55, %v2794_v49  ;;  %v3351_v19 = vadd.f32 %v3350_v33, %v3349_v41  ;;  %v2984_v52 = vpop.permute.xlu1 %2983 }
 0x34f   :  { %v2937_v10 = vadd.f32 %v2900_v25, %v2859_v36  ;;  %v2862_v60 = vadd.f32 %v3351_v19, %v2797_v14  ;;  %v2930_v6 = vpop.permute.xlu0 %2929 }
 0x351   :  { %v2945_v62 = vmax.f32 %v2937_v10, 0.0  ;;  %v2938_v31 = vadd.f32 %v2905_v57, %v2862_v60  ;;  %v3352_v20 = vpop.f32.mrb[148].mxu1  ;;  %v2989_v18 = vpop.permute.xlu1 %2988 }
 0x352   :  { %v3353_v45 = vpop.f32.mrb[149].mxu1 }
 0x353   :  { %v2946_v59 = vmax.f32 %v2938_v31, 0.0  ;;  %v3354_v11 = vadd.f32 %v3353_v45, %v3352_v20  ;;  %v3355_v9 = vpop.f32.mrb[150].mxu1  ;;  %v3001_v21 = vmul.f32 %v2964_v32, %v2945_v62  ;;  %v2935_v16 = vpop.permute.xlu0 %2934  ;;  %v3028_v62 = vlaneseq }
 0x354   :  { %v3356_v0 = vpop.f32.mrb[151].mxu1 }
 0x355   :  { %v3002_v37 = vmul.f32 %v2969_v27, %v2946_v59  ;;  %v2867_v50 = vadd.f32 %v3354_v11, %v2802_v48  ;;  %v3357_v34 = vadd.f32 %v3356_v0, %v3355_v9  ;;  %v2999_v10 = vpop.permute.xlu1 %2998 }
 0x357   :  { %v3009_v56 = vadd.f32 %v3002_v37, %v3001_v21  ;;  %v2939_v39 = vadd.f32 %v2910_v28, %v2867_v50  ;;  %v2870_v49 = vadd.f32 %v3357_v34, %v2805_v40  ;;  %v2994_v33 = vpop.permute.xlu0 %2993 }
 0x359   :  { %v2947_v14 = vmax.f32 %v2939_v39, 0.0  ;;  %v2940_v2 = vadd.f32 %v2915_v7, %v2870_v49  ;;  %v3358_v51 = vpop.f32.mrb[152].mxu1 }
 0x35a   :  { %v3359_v43 = vpop.f32.mrb[153].mxu1 }
 0x35b   :  { %v3003_v44 = vmul.f32 %v2974_v8, %v2947_v14  ;;  %v2948_v35 = vmax.f32 %v2940_v2, 0.0  ;;  %v3360_v29 = vadd.f32 %v3359_v43, %v3358_v51  ;;  %v3361_v22 = vpop.f32.mrb[154].mxu1  ;;  %v3026_v9 = vpop.permute.xlu0 %3025 }
 0x35c   :  { %v3362_v30 = vpop.f32.mrb[155].mxu1 }
 0x35d   :  { %v3010_v15 = vadd.f32 %v3009_v56, %v3003_v44  ;;  %v3004_v1 = vmul.f32 %v2979_v23, %v2948_v35  ;;  %v2875_v26 = vadd.f32 %v3360_v29, %v2810_v47  ;;  %v3363_v48 = vadd.f32 %v3362_v30, %v3361_v22 }
 0x35f   :  { %v3011_v46 = vadd.f32 %v3010_v15, %v3004_v1  ;;  %v2941_v57 = vadd.f32 %v2920_v17, %v2875_v26  ;;  %v2878_v58 = vadd.f32 %v3363_v48, %v2813_v53  ;;  %v3029_v17 = vshrl.u32 %v3028_v62, 7 }
 0x361   :  { %v2949_v40 = vmax.f32 %v2941_v57, 0.0  ;;  %v2942_v25 = vadd.f32 %v2925_v4, %v2878_v58  ;;  %v3364_v38 = vpop.f32.mrb[156].mxu1 }
 0x362   :  { %v3365_v12 = vpop.f32.mrb[157].mxu1 }
 0x363   :  { %v3005_v61 = vmul.f32 %v2984_v52, %v2949_v40  ;;  %v2950_v5 = vmax.f32 %v2942_v25, 0.0  ;;  %v3366_v7 = vadd.f32 %v3365_v12, %v3364_v38  ;;  %v3367_v63 = vpop.f32.mrb[158].mxu1 }
 0x364   :  { %v3368_v28 = vpop.f32.mrb[159].mxu1 }
 0x365   :  { %v3012_v54 = vadd.f32 %v3011_v46, %v3005_v61  ;;  %v3006_v13 = vmul.f32 %v2989_v18, %v2950_v5  ;;  %v2883_v47 = vadd.f32 %v3366_v7, %v5203_v42  ;;  %v3369_v24 = vadd.f32 %v3368_v28, %v3367_v63 }
 0x366   :  { %v3030_v42 = vsub.s32 0, %v3029_v17 }
 0x367   :  { %v3013_v27 = vadd.f32 %v3012_v54, %v3006_v13  ;;  %v2943_v55 = vadd.f32 %v2930_v6, %v2883_v47  ;;  %v2886_v53 = vadd.f32 %v3369_v24, %v5205_v3 }
 0x368   :  { %v3031_v3 = vrot.slane %v3026_v9, %v3030_v42 }
 0x369   :  { %v2951_v41 = vmax.f32 %v2943_v55, 0.0  ;;  %v2944_v32 = vadd.f32 %v2935_v16, %v2886_v53 }
 0x36b   :  { %v3007_v36 = vmul.f32 %v2994_v33, %v2951_v41  ;;  %v2952_v19 = vmax.f32 %v2944_v32, 0.0 }
 0x36d   :  { %v3014_v60 = vadd.f32 %v3013_v27, %v3007_v36  ;;  %v3008_v8 = vmul.f32 %v2999_v10, %v2952_v19 }
 0x36f   :  { %v3015_v31 = vadd.f32 %v3014_v60, %v3008_v8 }
 0x371   :  { %v3016_v20 = vrot.slane %v3015_v31, 4 }
 0x373   :  { %v3017_v45 = vadd.f32 %v3016_v20, %v3015_v31 }
 0x375   :  { %v3018_v59 = vrot.slane %v3017_v45, 2 }
 0x377   :  { %v3019_v11 = vadd.f32 %v3018_v59, %v3017_v45 }
 0x379   :  { %v3020_v0 = vrot.slane %v3019_v11, 1 }
 0x37b   :  { %v3021_v21 = vadd.f32 %v3020_v0, %v3019_v11 }
 0x37d   :  { %v3032_v37 = vadd.f32 %v3031_v3, %v3021_v21 }
 0x37f   :  { %3033 = vst [vmem:[#allocation9] sm:$0x1] %v3032_v37 }
 0x380   :  { %3696 = shalt.err (!%p3693_p0)
}
 0x381   :  { %s3697_s12 = scalar_lea.hbm %s5232_s11, 16 }
 0x382   :  { %p3698_p1 = scmp.ne.s32.totalorder %s5232_s11, %s3697_s12  ;;  %p3701_p2 = scmp.lt.u32.totalorder %s3697_s12, %s5232_s11 }
 0x384   :  { %p3703_p3 = pnand %p3701_p2, %p3698_p1 }
 0x386   :  { %3706 = shalt.err (!%p3703_p3)
}
 0x387   :  { %3043 = dma.vmem_to_hbm [thread:$0]  %s3041_s18, 16, %s5232_s11, [#allocation5]  }
 0x388   :  { %3711 = dma.done.wait [#allocation5], 16  }
 0x389   :  { %3712 = vsyncadd [#allocation5], 4294967280 }
 0x38a   :  { %3047 = vsyncpa [#allocation4], 1 }
 0x38b   :  { %3048 = vsyncpa [#allocation7], 1 }
 0x38c   :  { %3049 = vsyncpa [#allocation5], 1 }

</bundles_post_ra>
